<compile_context>
chip_gen: v7x
topology: tpu7x:2x2x1
jax: 0.10.0
libtpu: 0.0.40
codegen_flags: <defaults>
</compile_context>

<pallas_src>
import functools

import jax
import jax.numpy as jnp
import numpy as np
from jax.experimental import pallas as pl
from jax.experimental.pallas import tpu as pltpu


# ----------------------------- Pallas kernel -------------------------------


def _fused_lstm_fc_kernel(*refs, T, B, H, num_layers):
    """Whole forward pass in one kernel invocation (no grid).

    refs layout (inputs, then outputs, then scratch):
      refs[0]                      : x        (T*B, D)   bf16, time-major
      refs[1 + 3*l + 0]            : w_ih_t   (in_dim, 4H) bf16
      refs[1 + 3*l + 1]            : w_hh_t   (H, 4H)      bf16
      refs[1 + 3*l + 2]            : b        (1, 4H)      f32  (b_ih + b_hh)
      refs[1 + 3*num_layers + 0]   : fc_w_t   (H, C)       bf16
      refs[1 + 3*num_layers + 1]   : fc_b     (1, C)       f32
      refs[1 + 3*num_layers + 2]   : out      (B, C)       f32  (output)
      refs[1 + 3*num_layers + 3]   : hseq     (T*B, H)     f32  (VMEM scratch)
    """
    x_ref = refs[0]
    layer_refs = refs[1:1 + 3 * num_layers]
    fcw_ref = refs[1 + 3 * num_layers]
    fcb_ref = refs[2 + 3 * num_layers]
    out_ref = refs[3 + 3 * num_layers]
    hseq_ref = refs[4 + 3 * num_layers]

    # Layer-0 input: already time-major and bf16 (wrapper-side layout plumbing).
    seq = x_ref[...]                                  # (T*B, D) bf16

    h = None
    for layer in range(num_layers):
        wih = layer_refs[3 * layer + 0][...]          # (in_dim, 4H) bf16
        whh = layer_refs[3 * layer + 1][...]          # (H, 4H)      bf16
        b = layer_refs[3 * layer + 2][...]            # (1, 4H)      f32
        last_layer = layer == num_layers - 1

        # Hoisted input projection for the whole sequence: one MXU matmul.
        gx = jnp.dot(seq, wih, preferred_element_type=jnp.float32) + b  # (T*B,4H)

        c = None
        # Fully-unrolled serial recurrence (T is a small static Python int).
        for t in range(T):
            g = gx[t * B:(t + 1) * B, :]              # (B, 4H) f32, sublane slab
            if t > 0:
                # Recurrent matmul only when h != 0 (skipped at t == 0).
                g = g + jnp.dot(h.astype(jnp.bfloat16), whh,
                                preferred_element_type=jnp.float32)

            # Full-vreg transcendentals (2 EUP pushes), then static lane slices.
            sig = jax.nn.sigmoid(g)                   # (B, 4H)
            tg = jnp.tanh(g)                          # (B, 4H)
            i = sig[:, 0 * H:1 * H]
            f = sig[:, 1 * H:2 * H]
            gg = tg[:, 2 * H:3 * H]
            o = sig[:, 3 * H:4 * H]

            c = i * gg if t == 0 else f * c + i * gg  # f*c dropped at t == 0
            h = o * jnp.tanh(c)

            if not last_layer:
                # Hidden sequence slab for the next layer's input projection.
                hseq_ref[pl.ds(t * B, B), :] = h

        if not last_layer:
            seq = hseq_ref[...].astype(jnp.bfloat16)  # (T*B, H) bf16

    # FC head on hidden[-1] (last layer, final timestep) only.
    out_ref[...] = (
        jnp.dot(h.astype(jnp.bfloat16), fcw_ref[...],
                preferred_element_type=jnp.float32)
        + fcb_ref[...]
    )


# ------------------------------- Wrapper ------------------------------------


@jax.jit
def lstm_model_forward(x_btd, params):
    """Equivalent of LSTM.forward: x (B, T, input_size) -> (B, num_classes)."""
    B, T, D = x_btd.shape
    num_layers = len(params["lstm"])
    H = params["lstm"][0]["w_hh_t"].shape[0]
    C = params["fc_w_t"].shape[1]

    # Wrapper-side layout plumbing: time-major, flattened, bf16 MXU operand.
    x_flat = jnp.transpose(x_btd, (1, 0, 2)).reshape(T * B, D).astype(jnp.bfloat16)

    kernel = functools.partial(
        _fused_lstm_fc_kernel, T=T, B=B, H=H, num_layers=num_layers)

    args = [x_flat]
    for lp in params["lstm"]:
        args.extend([lp["w_ih_t"], lp["w_hh_t"], lp["b"]])
    args.extend([params["fc_w_t"], params["fc_b"]])

    # No grid: single kernel invocation, every operand is a whole-array VMEM
    # block (total footprint here is well under 1 MiB).
    return pl.pallas_call(
        kernel,
        out_shape=jax.ShapeDtypeStruct((B, C), jnp.float32),
        scratch_shapes=[pltpu.VMEM((T * B, H), jnp.float32)],
        compiler_params=pltpu.CompilerParams(vmem_limit_bytes=32 << 20),
    )(*args)


# ------------------------- Parameter initialization --------------------------


def init_params(key, input_size, hidden_size, num_layers, num_classes):
    """Deterministic init mimicking PyTorch's U(-1/sqrt(H), 1/sqrt(H)).

    Weight matrices are stored pre-transposed and in bf16 (MXU-native operand
    dtype); biases stay f32. Kernel and reference share these exact values.
    """
    bound = 1.0 / np.sqrt(hidden_size)
    layers = []
    for layer in range(num_layers):
        in_dim = input_size if layer == 0 else hidden_size
        key, k1, k2, k3, k4 = jax.random.split(key, 5)
        # PyTorch stores (4H, in) / (4H, H); we pre-transpose for x @ W.
        w_ih = jax.random.uniform(k1, (4 * hidden_size, in_dim),
                                  jnp.float32, -bound, bound)
        w_hh = jax.random.uniform(k2, (4 * hidden_size, hidden_size),
                                  jnp.float32, -bound, bound)
        b_ih = jax.random.uniform(k3, (4 * hidden_size,),
                                  jnp.float32, -bound, bound)
        b_hh = jax.random.uniform(k4, (4 * hidden_size,),
                                  jnp.float32, -bound, bound)
        layers.append({
            "w_ih_t": w_ih.T.astype(jnp.bfloat16),      # (in_dim, 4H)
            "w_hh_t": w_hh.T.astype(jnp.bfloat16),      # (H, 4H)
            "b": (b_ih + b_hh).reshape(1, -1),           # (1, 4H) f32
        })
    key, k5, k6 = jax.random.split(key, 3)
    fc_bound = 1.0 / np.sqrt(hidden_size)
    fc_w = jax.random.uniform(k5, (num_classes, hidden_size),
                              jnp.float32, -fc_bound, fc_bound)
    fc_b = jax.random.uniform(k6, (num_classes,),
                              jnp.float32, -fc_bound, fc_bound)
    return {"lstm": layers,
            "fc_w_t": fc_w.T.astype(jnp.bfloat16),
            "fc_b": fc_b.reshape(1, -1)}


# --------------------------- Pure-JAX reference ------------------------------


def reference_forward(x_btd, params):
    """f32 reference using the same (bf16-stored) weights, upcast to f32."""
    x = jnp.transpose(x_btd, (1, 0, 2)).astype(jnp.float32)  # (T, B, D)
    for lp in params["lstm"]:
        w_ih = lp["w_ih_t"].astype(jnp.float32)
        w_hh = lp["w_hh_t"].astype(jnp.float32)
        b = lp["b"]
        H = w_hh.shape[0]
        B = x.shape[1]

        def step(carry, x_t, w_ih=w_ih, w_hh=w_hh, b=b, H=H):
            h, c = carry
            gates = x_t @ w_ih + h @ w_hh + b
            i = jax.nn.sigmoid(gates[:, 0 * H:1 * H])
            f = jax.nn.sigmoid(gates[:, 1 * H:2 * H])
            g = jnp.tanh(gates[:, 2 * H:3 * H])
            o = jax.nn.sigmoid(gates[:, 3 * H:4 * H])
            c = f * c + i * g
            h = o * jnp.tanh(c)
            return (h, c), h

        init = (jnp.zeros((B, H), jnp.float32), jnp.zeros((B, H), jnp.float32))
        _, x = jax.lax.scan(step, init, x)
    return x[-1] @ params["fc_w_t"].astype(jnp.float32) + params["fc_b"]


# ---------------------------------- Main -------------------------------------


if __name__ == "__main__":
    INPUT_SIZE = 16
    HIDDEN_SIZE = 32
    NUM_LAYERS = 2
    NUM_CLASSES = 10
    BATCH = 8
    SEQ = 8

    key = jax.random.PRNGKey(0)
    key, xk = jax.random.split(key)
    x = jax.random.normal(xk, (BATCH, SEQ, INPUT_SIZE), jnp.float32)
    params = init_params(key, INPUT_SIZE, HIDDEN_SIZE, NUM_LAYERS, NUM_CLASSES)

    out = lstm_model_forward(x, params)
    out = jax.block_until_ready(out)

    ref = reference_forward(x, params)
    # bf16 matmul operands inside the kernel (f32 accumulation, shared weights):
    # activation-rounding only -> bf16-level tolerance against the f32 reference.
    np.testing.assert_allclose(np.asarray(out), np.asarray(ref),
                               rtol=2e-2, atol=2e-2)

    print("KERNEL_OK")
</pallas_src>

<mosaic_0001>
module attributes {stable_mosaic.version = 11 : i64} {
  func.func @_fused_lstm_fc_kernel(%arg0: memref<64x16xbf16, #tpu.memory_space<vmem>>, %arg1: memref<16x128xbf16, #tpu.memory_space<vmem>>, %arg2: memref<32x128xbf16, #tpu.memory_space<vmem>>, %arg3: memref<1x128xf32, #tpu.memory_space<vmem>>, %arg4: memref<32x128xbf16, #tpu.memory_space<vmem>>, %arg5: memref<32x128xbf16, #tpu.memory_space<vmem>>, %arg6: memref<1x128xf32, #tpu.memory_space<vmem>>, %arg7: memref<32x10xbf16, #tpu.memory_space<vmem>>, %arg8: memref<1x10xf32, #tpu.memory_space<vmem>>, %arg9: memref<8x10xf32, #tpu.memory_space<vmem>>, %arg10: memref<64x32xf32, #tpu.memory_space<vmem>>) attributes {dimension_semantics = [], scalar_prefetch = 0 : i64, scratch_operands = 1 : i64, tpu.core_type = #tpu.core_type<tc>} {
    %c0 = arith.constant 0 : index
    %c0_0 = arith.constant 0 : index
    %0 = vector.load %arg0[%c0, %c0_0] : memref<64x16xbf16, #tpu.memory_space<vmem>>, vector<64x16xbf16>
    %c0_1 = arith.constant 0 : index
    %c0_2 = arith.constant 0 : index
    %1 = vector.load %arg1[%c0_1, %c0_2] : memref<16x128xbf16, #tpu.memory_space<vmem>>, vector<16x128xbf16>
    %c0_3 = arith.constant 0 : index
    %c0_4 = arith.constant 0 : index
    %2 = vector.load %arg2[%c0_3, %c0_4] : memref<32x128xbf16, #tpu.memory_space<vmem>>, vector<32x128xbf16>
    %c0_5 = arith.constant 0 : index
    %c0_6 = arith.constant 0 : index
    %3 = vector.load %arg3[%c0_5, %c0_6] : memref<1x128xf32, #tpu.memory_space<vmem>>, vector<1x128xf32>
    %cst = arith.constant dense<0.000000e+00> : vector<64x128xf32>
    %4 = tpu.matmul %0, %1, %cst {dimension_numbers = #tpu.dot_dimension_numbers<[1], [0], [0], [1], [0, 0, 1, 1], [], []>} : vector<64x16xbf16>, vector<16x128xbf16>, vector<64x128xf32> -> vector<64x128xf32>
    %5 = vector.broadcast %3 : vector<1x128xf32> to vector<64x128xf32>
    %6 = arith.addf %4, %5 : vector<64x128xf32>
    %7 = vector.extract_strided_slice %6 {offsets = [0, 0], sizes = [8, 128], strides = [1, 1]} : vector<64x128xf32> to vector<8x128xf32>
    %8 = arith.negf %7 : vector<8x128xf32>
    %9 = math.exp %8 : vector<8x128xf32>
    %cst_7 = arith.constant 1.000000e+00 : f32
    %10 = vector.broadcast %cst_7 : f32 to vector<8x128xf32>
    %11 = arith.addf %10, %9 : vector<8x128xf32>
    %12 = arith.divf %10, %11 : vector<8x128xf32>
    %13 = math.tanh %7 : vector<8x128xf32>
    %14 = vector.extract_strided_slice %12 {offsets = [0, 0], sizes = [8, 32], strides = [1, 1]} : vector<8x128xf32> to vector<8x32xf32>
    %15 = vector.extract_strided_slice %13 {offsets = [0, 64], sizes = [8, 32], strides = [1, 1]} : vector<8x128xf32> to vector<8x32xf32>
    %16 = vector.extract_strided_slice %12 {offsets = [0, 96], sizes = [8, 32], strides = [1, 1]} : vector<8x128xf32> to vector<8x32xf32>
    %17 = arith.mulf %14, %15 : vector<8x32xf32>
    %18 = math.tanh %17 : vector<8x32xf32>
    %19 = arith.mulf %16, %18 : vector<8x32xf32>
    %c0_8 = arith.constant 0 : index
    %c0_9 = arith.constant 0 : index
    %20 = vector.load %arg10[%c0_8, %c0_9] : memref<64x32xf32, #tpu.memory_space<vmem>>, vector<8x32xf32>
    tpu.vector_store %arg10[%c0_8, %c0_9], %19 {strides = array<i32>} : memref<64x32xf32, #tpu.memory_space<vmem>>, vector<8x32xf32>,
    %21 = vector.extract_strided_slice %6 {offsets = [8, 0], sizes = [8, 128], strides = [1, 1]} : vector<64x128xf32> to vector<8x128xf32>
    %22 = arith.truncf %19 : vector<8x32xf32> to vector<8x32xbf16>
    %cst_10 = arith.constant dense<0.000000e+00> : vector<8x128xf32>
    %23 = tpu.matmul %22, %2, %cst_10 {dimension_numbers = #tpu.dot_dimension_numbers<[1], [0], [0], [1], [0, 0, 1, 1], [], []>} : vector<8x32xbf16>, vector<32x128xbf16>, vector<8x128xf32> -> vector<8x128xf32>
    %24 = arith.addf %21, %23 : vector<8x128xf32>
    %25 = arith.negf %24 : vector<8x128xf32>
    %26 = math.exp %25 : vector<8x128xf32>
    %cst_11 = arith.constant 1.000000e+00 : f32
    %27 = vector.broadcast %cst_11 : f32 to vector<8x128xf32>
    %28 = arith.addf %27, %26 : vector<8x128xf32>
    %29 = arith.divf %27, %28 : vector<8x128xf32>
    %30 = math.tanh %24 : vector<8x128xf32>
    %31 = vector.extract_strided_slice %29 {offsets = [0, 0], sizes = [8, 32], strides = [1, 1]} : vector<8x128xf32> to vector<8x32xf32>
    %32 = vector.extract_strided_slice %29 {offsets = [0, 32], sizes = [8, 32], strides = [1, 1]} : vector<8x128xf32> to vector<8x32xf32>
    %33 = vector.extract_strided_slice %30 {offsets = [0, 64], sizes = [8, 32], strides = [1, 1]} : vector<8x128xf32> to vector<8x32xf32>
    %34 = vector.extract_strided_slice %29 {offsets = [0, 96], sizes = [8, 32], strides = [1, 1]} : vector<8x128xf32> to vector<8x32xf32>
    %35 = arith.mulf %32, %17 : vector<8x32xf32>
    %36 = arith.mulf %31, %33 : vector<8x32xf32>
    %37 = arith.addf %35, %36 : vector<8x32xf32>
    %38 = math.tanh %37 : vector<8x32xf32>
    %39 = arith.mulf %34, %38 : vector<8x32xf32>
    %c8 = arith.constant 8 : index
    %c0_12 = arith.constant 0 : index
    %40 = vector.load %arg10[%c8, %c0_12] : memref<64x32xf32, #tpu.memory_space<vmem>>, vector<8x32xf32>
    tpu.vector_store %arg10[%c8, %c0_12], %39 {strides = array<i32>} : memref<64x32xf32, #tpu.memory_space<vmem>>, vector<8x32xf32>,
    %41 = vector.extract_strided_slice %6 {offsets = [16, 0], sizes = [8, 128], strides = [1, 1]} : vector<64x128xf32> to vector<8x128xf32>
    %42 = arith.truncf %39 : vector<8x32xf32> to vector<8x32xbf16>
    %cst_13 = arith.constant dense<0.000000e+00> : vector<8x128xf32>
    %43 = tpu.matmul %42, %2, %cst_13 {dimension_numbers = #tpu.dot_dimension_numbers<[1], [0], [0], [1], [0, 0, 1, 1], [], []>} : vector<8x32xbf16>, vector<32x128xbf16>, vector<8x128xf32> -> vector<8x128xf32>
    %44 = arith.addf %41, %43 : vector<8x128xf32>
    %45 = arith.negf %44 : vector<8x128xf32>
    %46 = math.exp %45 : vector<8x128xf32>
    %cst_14 = arith.constant 1.000000e+00 : f32
    %47 = vector.broadcast %cst_14 : f32 to vector<8x128xf32>
    %48 = arith.addf %47, %46 : vector<8x128xf32>
    %49 = arith.divf %47, %48 : vector<8x128xf32>
    %50 = math.tanh %44 : vector<8x128xf32>
    %51 = vector.extract_strided_slice %49 {offsets = [0, 0], sizes = [8, 32], strides = [1, 1]} : vector<8x128xf32> to vector<8x32xf32>
    %52 = vector.extract_strided_slice %49 {offsets = [0, 32], sizes = [8, 32], strides = [1, 1]} : vector<8x128xf32> to vector<8x32xf32>
    %53 = vector.extract_strided_slice %50 {offsets = [0, 64], sizes = [8, 32], strides = [1, 1]} : vector<8x128xf32> to vector<8x32xf32>
    %54 = vector.extract_strided_slice %49 {offsets = [0, 96], sizes = [8, 32], strides = [1, 1]} : vector<8x128xf32> to vector<8x32xf32>
    %55 = arith.mulf %52, %37 : vector<8x32xf32>
    %56 = arith.mulf %51, %53 : vector<8x32xf32>
    %57 = arith.addf %55, %56 : vector<8x32xf32>
    %58 = math.tanh %57 : vector<8x32xf32>
    %59 = arith.mulf %54, %58 : vector<8x32xf32>
    %c16 = arith.constant 16 : index
    %c0_15 = arith.constant 0 : index
    %60 = vector.load %arg10[%c16, %c0_15] : memref<64x32xf32, #tpu.memory_space<vmem>>, vector<8x32xf32>
    tpu.vector_store %arg10[%c16, %c0_15], %59 {strides = array<i32>} : memref<64x32xf32, #tpu.memory_space<vmem>>, vector<8x32xf32>,
    %61 = vector.extract_strided_slice %6 {offsets = [24, 0], sizes = [8, 128], strides = [1, 1]} : vector<64x128xf32> to vector<8x128xf32>
    %62 = arith.truncf %59 : vector<8x32xf32> to vector<8x32xbf16>
    %cst_16 = arith.constant dense<0.000000e+00> : vector<8x128xf32>
    %63 = tpu.matmul %62, %2, %cst_16 {dimension_numbers = #tpu.dot_dimension_numbers<[1], [0], [0], [1], [0, 0, 1, 1], [], []>} : vector<8x32xbf16>, vector<32x128xbf16>, vector<8x128xf32> -> vector<8x128xf32>
    %64 = arith.addf %61, %63 : vector<8x128xf32>
    %65 = arith.negf %64 : vector<8x128xf32>
    %66 = math.exp %65 : vector<8x128xf32>
    %cst_17 = arith.constant 1.000000e+00 : f32
    %67 = vector.broadcast %cst_17 : f32 to vector<8x128xf32>
    %68 = arith.addf %67, %66 : vector<8x128xf32>
    %69 = arith.divf %67, %68 : vector<8x128xf32>
    %70 = math.tanh %64 : vector<8x128xf32>
    %71 = vector.extract_strided_slice %69 {offsets = [0, 0], sizes = [8, 32], strides = [1, 1]} : vector<8x128xf32> to vector<8x32xf32>
    %72 = vector.extract_strided_slice %69 {offsets = [0, 32], sizes = [8, 32], strides = [1, 1]} : vector<8x128xf32> to vector<8x32xf32>
    %73 = vector.extract_strided_slice %70 {offsets = [0, 64], sizes = [8, 32], strides = [1, 1]} : vector<8x128xf32> to vector<8x32xf32>
    %74 = vector.extract_strided_slice %69 {offsets = [0, 96], sizes = [8, 32], strides = [1, 1]} : vector<8x128xf32> to vector<8x32xf32>
    %75 = arith.mulf %72, %57 : vector<8x32xf32>
    %76 = arith.mulf %71, %73 : vector<8x32xf32>
    %77 = arith.addf %75, %76 : vector<8x32xf32>
    %78 = math.tanh %77 : vector<8x32xf32>
    %79 = arith.mulf %74, %78 : vector<8x32xf32>
    %c24 = arith.constant 24 : index
    %c0_18 = arith.constant 0 : index
    %80 = vector.load %arg10[%c24, %c0_18] : memref<64x32xf32, #tpu.memory_space<vmem>>, vector<8x32xf32>
    tpu.vector_store %arg10[%c24, %c0_18], %79 {strides = array<i32>} : memref<64x32xf32, #tpu.memory_space<vmem>>, vector<8x32xf32>,
    %81 = vector.extract_strided_slice %6 {offsets = [32, 0], sizes = [8, 128], strides = [1, 1]} : vector<64x128xf32> to vector<8x128xf32>
    %82 = arith.truncf %79 : vector<8x32xf32> to vector<8x32xbf16>
    %cst_19 = arith.constant dense<0.000000e+00> : vector<8x128xf32>
    %83 = tpu.matmul %82, %2, %cst_19 {dimension_numbers = #tpu.dot_dimension_numbers<[1], [0], [0], [1], [0, 0, 1, 1], [], []>} : vector<8x32xbf16>, vector<32x128xbf16>, vector<8x128xf32> -> vector<8x128xf32>
    %84 = arith.addf %81, %83 : vector<8x128xf32>
    %85 = arith.negf %84 : vector<8x128xf32>
    %86 = math.exp %85 : vector<8x128xf32>
    %cst_20 = arith.constant 1.000000e+00 : f32
    %87 = vector.broadcast %cst_20 : f32 to vector<8x128xf32>
    %88 = arith.addf %87, %86 : vector<8x128xf32>
    %89 = arith.divf %87, %88 : vector<8x128xf32>
    %90 = math.tanh %84 : vector<8x128xf32>
    %91 = vector.extract_strided_slice %89 {offsets = [0, 0], sizes = [8, 32], strides = [1, 1]} : vector<8x128xf32> to vector<8x32xf32>
    %92 = vector.extract_strided_slice %89 {offsets = [0, 32], sizes = [8, 32], strides = [1, 1]} : vector<8x128xf32> to vector<8x32xf32>
    %93 = vector.extract_strided_slice %90 {offsets = [0, 64], sizes = [8, 32], strides = [1, 1]} : vector<8x128xf32> to vector<8x32xf32>
    %94 = vector.extract_strided_slice %89 {offsets = [0, 96], sizes = [8, 32], strides = [1, 1]} : vector<8x128xf32> to vector<8x32xf32>
    %95 = arith.mulf %92, %77 : vector<8x32xf32>
    %96 = arith.mulf %91, %93 : vector<8x32xf32>
    %97 = arith.addf %95, %96 : vector<8x32xf32>
    %98 = math.tanh %97 : vector<8x32xf32>
    %99 = arith.mulf %94, %98 : vector<8x32xf32>
    %c32 = arith.constant 32 : index
    %c0_21 = arith.constant 0 : index
    %100 = vector.load %arg10[%c32, %c0_21] : memref<64x32xf32, #tpu.memory_space<vmem>>, vector<8x32xf32>
    tpu.vector_store %arg10[%c32, %c0_21], %99 {strides = array<i32>} : memref<64x32xf32, #tpu.memory_space<vmem>>, vector<8x32xf32>,
    %101 = vector.extract_strided_slice %6 {offsets = [40, 0], sizes = [8, 128], strides = [1, 1]} : vector<64x128xf32> to vector<8x128xf32>
    %102 = arith.truncf %99 : vector<8x32xf32> to vector<8x32xbf16>
    %cst_22 = arith.constant dense<0.000000e+00> : vector<8x128xf32>
    %103 = tpu.matmul %102, %2, %cst_22 {dimension_numbers = #tpu.dot_dimension_numbers<[1], [0], [0], [1], [0, 0, 1, 1], [], []>} : vector<8x32xbf16>, vector<32x128xbf16>, vector<8x128xf32> -> vector<8x128xf32>
    %104 = arith.addf %101, %103 : vector<8x128xf32>
    %105 = arith.negf %104 : vector<8x128xf32>
    %106 = math.exp %105 : vector<8x128xf32>
    %cst_23 = arith.constant 1.000000e+00 : f32
    %107 = vector.broadcast %cst_23 : f32 to vector<8x128xf32>
    %108 = arith.addf %107, %106 : vector<8x128xf32>
    %109 = arith.divf %107, %108 : vector<8x128xf32>
    %110 = math.tanh %104 : vector<8x128xf32>
    %111 = vector.extract_strided_slice %109 {offsets = [0, 0], sizes = [8, 32], strides = [1, 1]} : vector<8x128xf32> to vector<8x32xf32>
    %112 = vector.extract_strided_slice %109 {offsets = [0, 32], sizes = [8, 32], strides = [1, 1]} : vector<8x128xf32> to vector<8x32xf32>
    %113 = vector.extract_strided_slice %110 {offsets = [0, 64], sizes = [8, 32], strides = [1, 1]} : vector<8x128xf32> to vector<8x32xf32>
    %114 = vector.extract_strided_slice %109 {offsets = [0, 96], sizes = [8, 32], strides = [1, 1]} : vector<8x128xf32> to vector<8x32xf32>
    %115 = arith.mulf %112, %97 : vector<8x32xf32>
    %116 = arith.mulf %111, %113 : vector<8x32xf32>
    %117 = arith.addf %115, %116 : vector<8x32xf32>
    %118 = math.tanh %117 : vector<8x32xf32>
    %119 = arith.mulf %114, %118 : vector<8x32xf32>
    %c40 = arith.constant 40 : index
    %c0_24 = arith.constant 0 : index
    %120 = vector.load %arg10[%c40, %c0_24] : memref<64x32xf32, #tpu.memory_space<vmem>>, vector<8x32xf32>
    tpu.vector_store %arg10[%c40, %c0_24], %119 {strides = array<i32>} : memref<64x32xf32, #tpu.memory_space<vmem>>, vector<8x32xf32>,
    %121 = vector.extract_strided_slice %6 {offsets = [48, 0], sizes = [8, 128], strides = [1, 1]} : vector<64x128xf32> to vector<8x128xf32>
    %122 = arith.truncf %119 : vector<8x32xf32> to vector<8x32xbf16>
    %cst_25 = arith.constant dense<0.000000e+00> : vector<8x128xf32>
    %123 = tpu.matmul %122, %2, %cst_25 {dimension_numbers = #tpu.dot_dimension_numbers<[1], [0], [0], [1], [0, 0, 1, 1], [], []>} : vector<8x32xbf16>, vector<32x128xbf16>, vector<8x128xf32> -> vector<8x128xf32>
    %124 = arith.addf %121, %123 : vector<8x128xf32>
    %125 = arith.negf %124 : vector<8x128xf32>
    %126 = math.exp %125 : vector<8x128xf32>
    %cst_26 = arith.constant 1.000000e+00 : f32
    %127 = vector.broadcast %cst_26 : f32 to vector<8x128xf32>
    %128 = arith.addf %127, %126 : vector<8x128xf32>
    %129 = arith.divf %127, %128 : vector<8x128xf32>
    %130 = math.tanh %124 : vector<8x128xf32>
    %131 = vector.extract_strided_slice %129 {offsets = [0, 0], sizes = [8, 32], strides = [1, 1]} : vector<8x128xf32> to vector<8x32xf32>
    %132 = vector.extract_strided_slice %129 {offsets = [0, 32], sizes = [8, 32], strides = [1, 1]} : vector<8x128xf32> to vector<8x32xf32>
    %133 = vector.extract_strided_slice %130 {offsets = [0, 64], sizes = [8, 32], strides = [1, 1]} : vector<8x128xf32> to vector<8x32xf32>
    %134 = vector.extract_strided_slice %129 {offsets = [0, 96], sizes = [8, 32], strides = [1, 1]} : vector<8x128xf32> to vector<8x32xf32>
    %135 = arith.mulf %132, %117 : vector<8x32xf32>
    %136 = arith.mulf %131, %133 : vector<8x32xf32>
    %137 = arith.addf %135, %136 : vector<8x32xf32>
    %138 = math.tanh %137 : vector<8x32xf32>
    %139 = arith.mulf %134, %138 : vector<8x32xf32>
    %c48 = arith.constant 48 : index
    %c0_27 = arith.constant 0 : index
    %140 = vector.load %arg10[%c48, %c0_27] : memref<64x32xf32, #tpu.memory_space<vmem>>, vector<8x32xf32>
    tpu.vector_store %arg10[%c48, %c0_27], %139 {strides = array<i32>} : memref<64x32xf32, #tpu.memory_space<vmem>>, vector<8x32xf32>,
    %141 = vector.extract_strided_slice %6 {offsets = [56, 0], sizes = [8, 128], strides = [1, 1]} : vector<64x128xf32> to vector<8x128xf32>
    %142 = arith.truncf %139 : vector<8x32xf32> to vector<8x32xbf16>
    %cst_28 = arith.constant dense<0.000000e+00> : vector<8x128xf32>
    %143 = tpu.matmul %142, %2, %cst_28 {dimension_numbers = #tpu.dot_dimension_numbers<[1], [0], [0], [1], [0, 0, 1, 1], [], []>} : vector<8x32xbf16>, vector<32x128xbf16>, vector<8x128xf32> -> vector<8x128xf32>
    %144 = arith.addf %141, %143 : vector<8x128xf32>
    %145 = arith.negf %144 : vector<8x128xf32>
    %146 = math.exp %145 : vector<8x128xf32>
    %cst_29 = arith.constant 1.000000e+00 : f32
    %147 = vector.broadcast %cst_29 : f32 to vector<8x128xf32>
    %148 = arith.addf %147, %146 : vector<8x128xf32>
    %149 = arith.divf %147, %148 : vector<8x128xf32>
    %150 = math.tanh %144 : vector<8x128xf32>
    %151 = vector.extract_strided_slice %149 {offsets = [0, 0], sizes = [8, 32], strides = [1, 1]} : vector<8x128xf32> to vector<8x32xf32>
    %152 = vector.extract_strided_slice %149 {offsets = [0, 32], sizes = [8, 32], strides = [1, 1]} : vector<8x128xf32> to vector<8x32xf32>
    %153 = vector.extract_strided_slice %150 {offsets = [0, 64], sizes = [8, 32], strides = [1, 1]} : vector<8x128xf32> to vector<8x32xf32>
    %154 = vector.extract_strided_slice %149 {offsets = [0, 96], sizes = [8, 32], strides = [1, 1]} : vector<8x128xf32> to vector<8x32xf32>
    %155 = arith.mulf %152, %137 : vector<8x32xf32>
    %156 = arith.mulf %151, %153 : vector<8x32xf32>
    %157 = arith.addf %155, %156 : vector<8x32xf32>
    %158 = math.tanh %157 : vector<8x32xf32>
    %159 = arith.mulf %154, %158 : vector<8x32xf32>
    %c56 = arith.constant 56 : index
    %c0_30 = arith.constant 0 : index
    %160 = vector.load %arg10[%c56, %c0_30] : memref<64x32xf32, #tpu.memory_space<vmem>>, vector<8x32xf32>
    tpu.vector_store %arg10[%c56, %c0_30], %159 {strides = array<i32>} : memref<64x32xf32, #tpu.memory_space<vmem>>, vector<8x32xf32>,
    %c0_31 = arith.constant 0 : index
    %c0_32 = arith.constant 0 : index
    %161 = vector.load %arg10[%c0_31, %c0_32] : memref<64x32xf32, #tpu.memory_space<vmem>>, vector<64x32xf32>
    %162 = arith.truncf %161 : vector<64x32xf32> to vector<64x32xbf16>
    %c0_33 = arith.constant 0 : index
    %c0_34 = arith.constant 0 : index
    %163 = vector.load %arg4[%c0_33, %c0_34] : memref<32x128xbf16, #tpu.memory_space<vmem>>, vector<32x128xbf16>
    %c0_35 = arith.constant 0 : index
    %c0_36 = arith.constant 0 : index
    %164 = vector.load %arg5[%c0_35, %c0_36] : memref<32x128xbf16, #tpu.memory_space<vmem>>, vector<32x128xbf16>
    %c0_37 = arith.constant 0 : index
    %c0_38 = arith.constant 0 : index
    %165 = vector.load %arg6[%c0_37, %c0_38] : memref<1x128xf32, #tpu.memory_space<vmem>>, vector<1x128xf32>
    %cst_39 = arith.constant dense<0.000000e+00> : vector<64x128xf32>
    %166 = tpu.matmul %162, %163, %cst_39 {dimension_numbers = #tpu.dot_dimension_numbers<[1], [0], [0], [1], [0, 0, 1, 1], [], []>} : vector<64x32xbf16>, vector<32x128xbf16>, vector<64x128xf32> -> vector<64x128xf32>
    %167 = vector.broadcast %165 : vector<1x128xf32> to vector<64x128xf32>
    %168 = arith.addf %166, %167 : vector<64x128xf32>
    %169 = vector.extract_strided_slice %168 {offsets = [0, 0], sizes = [8, 128], strides = [1, 1]} : vector<64x128xf32> to vector<8x128xf32>
    %170 = arith.negf %169 : vector<8x128xf32>
    %171 = math.exp %170 : vector<8x128xf32>
    %cst_40 = arith.constant 1.000000e+00 : f32
    %172 = vector.broadcast %cst_40 : f32 to vector<8x128xf32>
    %173 = arith.addf %172, %171 : vector<8x128xf32>
    %174 = arith.divf %172, %173 : vector<8x128xf32>
    %175 = math.tanh %169 : vector<8x128xf32>
    %176 = vector.extract_strided_slice %174 {offsets = [0, 0], sizes = [8, 32], strides = [1, 1]} : vector<8x128xf32> to vector<8x32xf32>
    %177 = vector.extract_strided_slice %175 {offsets = [0, 64], sizes = [8, 32], strides = [1, 1]} : vector<8x128xf32> to vector<8x32xf32>
    %178 = vector.extract_strided_slice %174 {offsets = [0, 96], sizes = [8, 32], strides = [1, 1]} : vector<8x128xf32> to vector<8x32xf32>
    %179 = arith.mulf %176, %177 : vector<8x32xf32>
    %180 = math.tanh %179 : vector<8x32xf32>
    %181 = arith.mulf %178, %180 : vector<8x32xf32>
    %182 = vector.extract_strided_slice %168 {offsets = [8, 0], sizes = [8, 128], strides = [1, 1]} : vector<64x128xf32> to vector<8x128xf32>
    %183 = arith.truncf %181 : vector<8x32xf32> to vector<8x32xbf16>
    %cst_41 = arith.constant dense<0.000000e+00> : vector<8x128xf32>
    %184 = tpu.matmul %183, %164, %cst_41 {dimension_numbers = #tpu.dot_dimension_numbers<[1], [0], [0], [1], [0, 0, 1, 1], [], []>} : vector<8x32xbf16>, vector<32x128xbf16>, vector<8x128xf32> -> vector<8x128xf32>
    %185 = arith.addf %182, %184 : vector<8x128xf32>
    %186 = arith.negf %185 : vector<8x128xf32>
    %187 = math.exp %186 : vector<8x128xf32>
    %cst_42 = arith.constant 1.000000e+00 : f32
    %188 = vector.broadcast %cst_42 : f32 to vector<8x128xf32>
    %189 = arith.addf %188, %187 : vector<8x128xf32>
    %190 = arith.divf %188, %189 : vector<8x128xf32>
    %191 = math.tanh %185 : vector<8x128xf32>
    %192 = vector.extract_strided_slice %190 {offsets = [0, 0], sizes = [8, 32], strides = [1, 1]} : vector<8x128xf32> to vector<8x32xf32>
    %193 = vector.extract_strided_slice %190 {offsets = [0, 32], sizes = [8, 32], strides = [1, 1]} : vector<8x128xf32> to vector<8x32xf32>
    %194 = vector.extract_strided_slice %191 {offsets = [0, 64], sizes = [8, 32], strides = [1, 1]} : vector<8x128xf32> to vector<8x32xf32>
    %195 = vector.extract_strided_slice %190 {offsets = [0, 96], sizes = [8, 32], strides = [1, 1]} : vector<8x128xf32> to vector<8x32xf32>
    %196 = arith.mulf %193, %179 : vector<8x32xf32>
    %197 = arith.mulf %192, %194 : vector<8x32xf32>
    %198 = arith.addf %196, %197 : vector<8x32xf32>
    %199 = math.tanh %198 : vector<8x32xf32>
    %200 = arith.mulf %195, %199 : vector<8x32xf32>
    %201 = vector.extract_strided_slice %168 {offsets = [16, 0], sizes = [8, 128], strides = [1, 1]} : vector<64x128xf32> to vector<8x128xf32>
    %202 = arith.truncf %200 : vector<8x32xf32> to vector<8x32xbf16>
    %cst_43 = arith.constant dense<0.000000e+00> : vector<8x128xf32>
    %203 = tpu.matmul %202, %164, %cst_43 {dimension_numbers = #tpu.dot_dimension_numbers<[1], [0], [0], [1], [0, 0, 1, 1], [], []>} : vector<8x32xbf16>, vector<32x128xbf16>, vector<8x128xf32> -> vector<8x128xf32>
    %204 = arith.addf %201, %203 : vector<8x128xf32>
    %205 = arith.negf %204 : vector<8x128xf32>
    %206 = math.exp %205 : vector<8x128xf32>
    %cst_44 = arith.constant 1.000000e+00 : f32
    %207 = vector.broadcast %cst_44 : f32 to vector<8x128xf32>
    %208 = arith.addf %207, %206 : vector<8x128xf32>
    %209 = arith.divf %207, %208 : vector<8x128xf32>
    %210 = math.tanh %204 : vector<8x128xf32>
    %211 = vector.extract_strided_slice %209 {offsets = [0, 0], sizes = [8, 32], strides = [1, 1]} : vector<8x128xf32> to vector<8x32xf32>
    %212 = vector.extract_strided_slice %209 {offsets = [0, 32], sizes = [8, 32], strides = [1, 1]} : vector<8x128xf32> to vector<8x32xf32>
    %213 = vector.extract_strided_slice %210 {offsets = [0, 64], sizes = [8, 32], strides = [1, 1]} : vector<8x128xf32> to vector<8x32xf32>
    %214 = vector.extract_strided_slice %209 {offsets = [0, 96], sizes = [8, 32], strides = [1, 1]} : vector<8x128xf32> to vector<8x32xf32>
    %215 = arith.mulf %212, %198 : vector<8x32xf32>
    %216 = arith.mulf %211, %213 : vector<8x32xf32>
    %217 = arith.addf %215, %216 : vector<8x32xf32>
    %218 = math.tanh %217 : vector<8x32xf32>
    %219 = arith.mulf %214, %218 : vector<8x32xf32>
    %220 = vector.extract_strided_slice %168 {offsets = [24, 0], sizes = [8, 128], strides = [1, 1]} : vector<64x128xf32> to vector<8x128xf32>
    %221 = arith.truncf %219 : vector<8x32xf32> to vector<8x32xbf16>
    %cst_45 = arith.constant dense<0.000000e+00> : vector<8x128xf32>
    %222 = tpu.matmul %221, %164, %cst_45 {dimension_numbers = #tpu.dot_dimension_numbers<[1], [0], [0], [1], [0, 0, 1, 1], [], []>} : vector<8x32xbf16>, vector<32x128xbf16>, vector<8x128xf32> -> vector<8x128xf32>
    %223 = arith.addf %220, %222 : vector<8x128xf32>
    %224 = arith.negf %223 : vector<8x128xf32>
    %225 = math.exp %224 : vector<8x128xf32>
    %cst_46 = arith.constant 1.000000e+00 : f32
    %226 = vector.broadcast %cst_46 : f32 to vector<8x128xf32>
    %227 = arith.addf %226, %225 : vector<8x128xf32>
    %228 = arith.divf %226, %227 : vector<8x128xf32>
    %229 = math.tanh %223 : vector<8x128xf32>
    %230 = vector.extract_strided_slice %228 {offsets = [0, 0], sizes = [8, 32], strides = [1, 1]} : vector<8x128xf32> to vector<8x32xf32>
    %231 = vector.extract_strided_slice %228 {offsets = [0, 32], sizes = [8, 32], strides = [1, 1]} : vector<8x128xf32> to vector<8x32xf32>
    %232 = vector.extract_strided_slice %229 {offsets = [0, 64], sizes = [8, 32], strides = [1, 1]} : vector<8x128xf32> to vector<8x32xf32>
    %233 = vector.extract_strided_slice %228 {offsets = [0, 96], sizes = [8, 32], strides = [1, 1]} : vector<8x128xf32> to vector<8x32xf32>
    %234 = arith.mulf %231, %217 : vector<8x32xf32>
    %235 = arith.mulf %230, %232 : vector<8x32xf32>
    %236 = arith.addf %234, %235 : vector<8x32xf32>
    %237 = math.tanh %236 : vector<8x32xf32>
    %238 = arith.mulf %233, %237 : vector<8x32xf32>
    %239 = vector.extract_strided_slice %168 {offsets = [32, 0], sizes = [8, 128], strides = [1, 1]} : vector<64x128xf32> to vector<8x128xf32>
    %240 = arith.truncf %238 : vector<8x32xf32> to vector<8x32xbf16>
    %cst_47 = arith.constant dense<0.000000e+00> : vector<8x128xf32>
    %241 = tpu.matmul %240, %164, %cst_47 {dimension_numbers = #tpu.dot_dimension_numbers<[1], [0], [0], [1], [0, 0, 1, 1], [], []>} : vector<8x32xbf16>, vector<32x128xbf16>, vector<8x128xf32> -> vector<8x128xf32>
    %242 = arith.addf %239, %241 : vector<8x128xf32>
    %243 = arith.negf %242 : vector<8x128xf32>
    %244 = math.exp %243 : vector<8x128xf32>
    %cst_48 = arith.constant 1.000000e+00 : f32
    %245 = vector.broadcast %cst_48 : f32 to vector<8x128xf32>
    %246 = arith.addf %245, %244 : vector<8x128xf32>
    %247 = arith.divf %245, %246 : vector<8x128xf32>
    %248 = math.tanh %242 : vector<8x128xf32>
    %249 = vector.extract_strided_slice %247 {offsets = [0, 0], sizes = [8, 32], strides = [1, 1]} : vector<8x128xf32> to vector<8x32xf32>
    %250 = vector.extract_strided_slice %247 {offsets = [0, 32], sizes = [8, 32], strides = [1, 1]} : vector<8x128xf32> to vector<8x32xf32>
    %251 = vector.extract_strided_slice %248 {offsets = [0, 64], sizes = [8, 32], strides = [1, 1]} : vector<8x128xf32> to vector<8x32xf32>
    %252 = vector.extract_strided_slice %247 {offsets = [0, 96], sizes = [8, 32], strides = [1, 1]} : vector<8x128xf32> to vector<8x32xf32>
    %253 = arith.mulf %250, %236 : vector<8x32xf32>
    %254 = arith.mulf %249, %251 : vector<8x32xf32>
    %255 = arith.addf %253, %254 : vector<8x32xf32>
    %256 = math.tanh %255 : vector<8x32xf32>
    %257 = arith.mulf %252, %256 : vector<8x32xf32>
    %258 = vector.extract_strided_slice %168 {offsets = [40, 0], sizes = [8, 128], strides = [1, 1]} : vector<64x128xf32> to vector<8x128xf32>
    %259 = arith.truncf %257 : vector<8x32xf32> to vector<8x32xbf16>
    %cst_49 = arith.constant dense<0.000000e+00> : vector<8x128xf32>
    %260 = tpu.matmul %259, %164, %cst_49 {dimension_numbers = #tpu.dot_dimension_numbers<[1], [0], [0], [1], [0, 0, 1, 1], [], []>} : vector<8x32xbf16>, vector<32x128xbf16>, vector<8x128xf32> -> vector<8x128xf32>
    %261 = arith.addf %258, %260 : vector<8x128xf32>
    %262 = arith.negf %261 : vector<8x128xf32>
    %263 = math.exp %262 : vector<8x128xf32>
    %cst_50 = arith.constant 1.000000e+00 : f32
    %264 = vector.broadcast %cst_50 : f32 to vector<8x128xf32>
    %265 = arith.addf %264, %263 : vector<8x128xf32>
    %266 = arith.divf %264, %265 : vector<8x128xf32>
    %267 = math.tanh %261 : vector<8x128xf32>
    %268 = vector.extract_strided_slice %266 {offsets = [0, 0], sizes = [8, 32], strides = [1, 1]} : vector<8x128xf32> to vector<8x32xf32>
    %269 = vector.extract_strided_slice %266 {offsets = [0, 32], sizes = [8, 32], strides = [1, 1]} : vector<8x128xf32> to vector<8x32xf32>
    %270 = vector.extract_strided_slice %267 {offsets = [0, 64], sizes = [8, 32], strides = [1, 1]} : vector<8x128xf32> to vector<8x32xf32>
    %271 = vector.extract_strided_slice %266 {offsets = [0, 96], sizes = [8, 32], strides = [1, 1]} : vector<8x128xf32> to vector<8x32xf32>
    %272 = arith.mulf %269, %255 : vector<8x32xf32>
    %273 = arith.mulf %268, %270 : vector<8x32xf32>
    %274 = arith.addf %272, %273 : vector<8x32xf32>
    %275 = math.tanh %274 : vector<8x32xf32>
    %276 = arith.mulf %271, %275 : vector<8x32xf32>
    %277 = vector.extract_strided_slice %168 {offsets = [48, 0], sizes = [8, 128], strides = [1, 1]} : vector<64x128xf32> to vector<8x128xf32>
    %278 = arith.truncf %276 : vector<8x32xf32> to vector<8x32xbf16>
    %cst_51 = arith.constant dense<0.000000e+00> : vector<8x128xf32>
    %279 = tpu.matmul %278, %164, %cst_51 {dimension_numbers = #tpu.dot_dimension_numbers<[1], [0], [0], [1], [0, 0, 1, 1], [], []>} : vector<8x32xbf16>, vector<32x128xbf16>, vector<8x128xf32> -> vector<8x128xf32>
    %280 = arith.addf %277, %279 : vector<8x128xf32>
    %281 = arith.negf %280 : vector<8x128xf32>
    %282 = math.exp %281 : vector<8x128xf32>
    %cst_52 = arith.constant 1.000000e+00 : f32
    %283 = vector.broadcast %cst_52 : f32 to vector<8x128xf32>
    %284 = arith.addf %283, %282 : vector<8x128xf32>
    %285 = arith.divf %283, %284 : vector<8x128xf32>
    %286 = math.tanh %280 : vector<8x128xf32>
    %287 = vector.extract_strided_slice %285 {offsets = [0, 0], sizes = [8, 32], strides = [1, 1]} : vector<8x128xf32> to vector<8x32xf32>
    %288 = vector.extract_strided_slice %285 {offsets = [0, 32], sizes = [8, 32], strides = [1, 1]} : vector<8x128xf32> to vector<8x32xf32>
    %289 = vector.extract_strided_slice %286 {offsets = [0, 64], sizes = [8, 32], strides = [1, 1]} : vector<8x128xf32> to vector<8x32xf32>
    %290 = vector.extract_strided_slice %285 {offsets = [0, 96], sizes = [8, 32], strides = [1, 1]} : vector<8x128xf32> to vector<8x32xf32>
    %291 = arith.mulf %288, %274 : vector<8x32xf32>
    %292 = arith.mulf %287, %289 : vector<8x32xf32>
    %293 = arith.addf %291, %292 : vector<8x32xf32>
    %294 = math.tanh %293 : vector<8x32xf32>
    %295 = arith.mulf %290, %294 : vector<8x32xf32>
    %296 = vector.extract_strided_slice %168 {offsets = [56, 0], sizes = [8, 128], strides = [1, 1]} : vector<64x128xf32> to vector<8x128xf32>
    %297 = arith.truncf %295 : vector<8x32xf32> to vector<8x32xbf16>
    %cst_53 = arith.constant dense<0.000000e+00> : vector<8x128xf32>
    %298 = tpu.matmul %297, %164, %cst_53 {dimension_numbers = #tpu.dot_dimension_numbers<[1], [0], [0], [1], [0, 0, 1, 1], [], []>} : vector<8x32xbf16>, vector<32x128xbf16>, vector<8x128xf32> -> vector<8x128xf32>
    %299 = arith.addf %296, %298 : vector<8x128xf32>
    %300 = arith.negf %299 : vector<8x128xf32>
    %301 = math.exp %300 : vector<8x128xf32>
    %cst_54 = arith.constant 1.000000e+00 : f32
    %302 = vector.broadcast %cst_54 : f32 to vector<8x128xf32>
    %303 = arith.addf %302, %301 : vector<8x128xf32>
    %304 = arith.divf %302, %303 : vector<8x128xf32>
    %305 = math.tanh %299 : vector<8x128xf32>
    %306 = vector.extract_strided_slice %304 {offsets = [0, 0], sizes = [8, 32], strides = [1, 1]} : vector<8x128xf32> to vector<8x32xf32>
    %307 = vector.extract_strided_slice %304 {offsets = [0, 32], sizes = [8, 32], strides = [1, 1]} : vector<8x128xf32> to vector<8x32xf32>
    %308 = vector.extract_strided_slice %305 {offsets = [0, 64], sizes = [8, 32], strides = [1, 1]} : vector<8x128xf32> to vector<8x32xf32>
    %309 = vector.extract_strided_slice %304 {offsets = [0, 96], sizes = [8, 32], strides = [1, 1]} : vector<8x128xf32> to vector<8x32xf32>
    %310 = arith.mulf %307, %293 : vector<8x32xf32>
    %311 = arith.mulf %306, %308 : vector<8x32xf32>
    %312 = arith.addf %310, %311 : vector<8x32xf32>
    %313 = math.tanh %312 : vector<8x32xf32>
    %314 = arith.mulf %309, %313 : vector<8x32xf32>
    %315 = arith.truncf %314 : vector<8x32xf32> to vector<8x32xbf16>
    %c0_55 = arith.constant 0 : index
    %c0_56 = arith.constant 0 : index
    %316 = vector.load %arg7[%c0_55, %c0_56] : memref<32x10xbf16, #tpu.memory_space<vmem>>, vector<32x10xbf16>
    %cst_57 = arith.constant dense<0.000000e+00> : vector<8x10xf32>
    %317 = tpu.matmul %315, %316, %cst_57 {dimension_numbers = #tpu.dot_dimension_numbers<[1], [0], [0], [1], [0, 0, 1, 1], [], []>} : vector<8x32xbf16>, vector<32x10xbf16>, vector<8x10xf32> -> vector<8x10xf32>
    %c0_58 = arith.constant 0 : index
    %c0_59 = arith.constant 0 : index
    %318 = vector.load %arg8[%c0_58, %c0_59] : memref<1x10xf32, #tpu.memory_space<vmem>>, vector<1x10xf32>
    %319 = vector.broadcast %318 : vector<1x10xf32> to vector<8x10xf32>
    %320 = arith.addf %317, %319 : vector<8x10xf32>
    %c0_60 = arith.constant 0 : index
    %c0_61 = arith.constant 0 : index
    %321 = vector.load %arg9[%c0_60, %c0_61] : memref<8x10xf32, #tpu.memory_space<vmem>>, vector<8x10xf32>
    tpu.vector_store %arg9[%c0_60, %c0_61], %320 {strides = array<i32>} : memref<8x10xf32, #tpu.memory_space<vmem>>, vector<8x10xf32>,
    return
  }
}

</mosaic_0001>

<bundles_post_ra>
// kernel: lstm_model_forward.1
= control target key start
LH: loop header
LB: loop body
LE: loop exit
PB: predicated region body
PF: predicated region fallthrough
CT: control target
= control target key end

     0   :  { %vm81_vm0 = vcmask 130048   ;;  %s2312_s0 = inlined_call_operand.vmem [shape: bf16[64,16], index: 0, kind: input, shape index: {}]   ;;  %s2313_s1 = inlined_call_operand.vmem [shape: bf16[16,128], index: 1, kind: input, shape index: {}]   ;;  %s2314_s2 = inlined_call_operand.vmem [shape: bf16[32,128], index: 2, kind: input, shape index: {}]   ;;  %s2315_s3 = inlined_call_operand.vmem [shape: f32[1,128], index: 3, kind: input, shape index: {}]   ;;  %s2316_s4 = inlined_call_operand.vmem [shape: bf16[32,128], index: 4, kind: input, shape index: {}]   ;;  %s2317_s5 = inlined_call_operand.vmem [shape: bf16[32,128], index: 5, kind: input, shape index: {}]   ;;  %s2318_s6 = inlined_call_operand.vmem [shape: f32[1,128], index: 6, kind: input, shape index: {}]   ;;  %s2319_s7 = inlined_call_operand.vmem [shape: bf16[32,10], index: 7, kind: input, shape index: {}]   ;;  %s2320_s8 = inlined_call_operand.vmem [shape: f32[1,10], index: 8, kind: input, shape index: {}]   ;;  %s2321_s9 = inlined_call_operand.hbm [shape: f32[8,10], index: 9, kind: output, shape index: {}]  }
   0x1   :  { %v1737_v0 = vld [vmem:[%s2313_s1] sm:$0xff]   ;;  %v1739_v2 = vld [vmem:[%s2312_s0 + $0x8] sm:$0xff]  }
   0x2   :  { %v1738_v1 = vld [vmem:[%s2312_s0] sm:$0xff]   ;;  %1589 = vmatprep.subr.bf16.mxu0 %v1737_v0 }
   0x3   :  { %1590 = vmatpush3.bf16.msra.mxu0 %v1737_v0  ;;  %1591 = vmatprep.mubr.msk.bf16.mxu0 %vm81_vm0, %v1738_v1 }
   0x6   :  { %1592 = vmatmul.mubr.msk.bf16.vlgmr.msra.gmra.mrb[0].mxu0 %vm81_vm0, %v1739_v2 }
   0x7   :  { %14 = vsyncpa [#allocation4], 0  ;;  %v1972_v3 = vld [vmem:[%s2315_s3] ss:$0 sm:$0xff]  ;;  %s1902_s1 = smov 64   ;;  %v1903_v17 = vmov 0.0  }
   0x8   :  { %v1983_v16 = vld [vmem:[%s2314_s2] sm:$0xff]   ;;  %1599 = vmatprep.subr.bf16.mxu1 %v1903_v17  ;;  %vm1904_vm1 = vmmov 0   ;;  %v1992_v18 = vld [vmem:[%s2314_s2 + $0x8] sm:$0xff]   ;;  %1615 = vmatprep.subr.bf16.mxu0 %v1903_v17  ;;  %s1905_s20 = smov 96   ;;  %s1906_s2 = smov 32   ;;  %vm181_vm2 = vcmask 261120  }
   0x9   :  { %1603 = vmatprep.mubr.msk.bf16.mxu1 %vm1904_vm1, %v1903_v17  ;;  %1600 = vmatpush3.bf16.msra.mxu1 %v1983_v16  ;;  %v1742_v62 = vld [vmem:[%s2312_s0 + $0x10] sm:$0xff]   ;;  %v1743_v63 = vld [vmem:[%s2312_s0 + $0x18] sm:$0xff]   ;;  %s1907_s16 = smov [#allocation3]   ;;  %vm1462_vm3 = vcmask 80896  }
   0xa   :  { %1601 = vmatprep.subr.bf16.mxu1 %v1903_v17  ;;  %1616 = vmatpush3.bf16.msra.mxu0 %v1983_v16 }
   0xb   :  { %1617 = vmatprep.subr.bf16.mxu0 %v1903_v17  ;;  %1595 = vmatprep.mubr.msk.bf16.mxu0 %vm81_vm0, %v1742_v62 }
   0xd   :  { %1602 = vmatpush3.bf16.msra.mxu1 %v1992_v18 }
   0xe   :  { %1607 = vmatprep.subr.bf16.mxu1 %v1903_v17  ;;  %1618 = vmatpush3.bf16.msra.mxu0 %v1992_v18 }
   0xf   :  { %1631 = vmatprep.subr.bf16.mxu0 %v1903_v17  ;;  %1596 = vmatmul.mubr.msk.bf16.gmra.mrb[4].mxu0 %vm81_vm0, %v1743_v63 }
  0x10   :  { %1619 = vmatprep.mubr.msk.bf16.mxu0 %vm1904_vm1, %v1903_v17 }
  0xd9   :  { %v1974_v4 = vpop.f32.mrb[0].mxu0 }
  0xda   :  { %v128_v5 = vpop.f32.mrb[1].mxu0  ;;  %v137_v46 = vadd.f32 %v1974_v4, %v1972_v3 }
  0xdb   :  { %v129_v6 = vadd.f32 %v1972_v3, %v128_v5  ;;  %v1977_v7 = vpop.f32.mrb[2].mxu0 }
  0xdc   :  { %v131_v8 = vpop.f32.mrb[3].mxu0 }
  0xdd   :  { %1750 = vtanh.f32 %v129_v6  ;;  %v1488_v10 = vmul.f32 -1.442695, %v129_v6  ;;  %v132_v24 = vadd.f32 %v1972_v3, %v131_v8 }
  0xdf   :  { %1752 = vpow2.f32 %v1488_v10 }
  0xe2   :  { %v2052_v5 = vpop.f32.mrb[4].mxu0 }
  0xe3   :  { %v144_v6 = vpop.f32.mrb[5].mxu0 }
  0xe4   :  { %v2054_v8 = vpop.f32.mrb[6].mxu0 }
  0xe7   :  { %v1751_v9 = vpop.eup %1750 }
  0xe8   :  { %167 = vrot.lane.b32.xlu0 %v1751_v9, %s1902_s1  ;;  %v2056_v9 = vpop.f32.mrb[7].mxu0 }
  0xe9   :  { %v1753_v11 = vpop.eup %1752 }
  0xea   :  { %v162_v12 = vadd.f32 1.0, %v1753_v11  ;;  %v140_v11 = vadd.f32 %v1977_v7, %v1972_v3 }
  0xec   :  { %1754 = vrcp.f32 %v162_v12 }
  0xf6   :  { %v1755_v13 = vpop.eup %1754 }
 0x15a   :  { %v168_v14 = vpop.permute.xlu0 %167 }
 0x15b   :  { %v170_v15 = vmul.f32 %v1755_v13, %v168_v14 }
 0x15d   :  { %1756 = vtanh.f32 %v170_v15 }
 0x167   :  { %v1757_v19 = vpop.eup %1756 }
 0x168   :  { %173 = vrot.lane.b32.xlu0 %v1757_v19, %s1905_s20 }
 0x16c   :  { %251 = vrot.lane.b32.xlu0 %v170_v15, %s1906_s2 }
 0x1da   :  { %v174_v20 = vpop.permute.xlu0 %173 }
 0x1db   :  { %v2004_v21 = vmul.f32 %v1755_v13, %v174_v20 }
 0x1dd   :  { %v183_v22 = vpack.c.bf16 %v2004_v21, %v2004_v21 }
 0x1de   :  { %v252_v37 = vpop.permute.xlu0 %251 }
 0x1df   :  { %185 = vrot.lane.b32.xlu1 %v183_v22, %s1906_s2 }
 0x251   :  { %v186_v23 = vpop.permute.xlu1 %185 }
 0x252   :  { %1604 = vmatmul.mubr.msk.bf16.vlgmr.msra.gmra.mrb[0].mxu1 %vm181_vm2, %v186_v23 }
 0x253   :  { %1608 = vmatpush3.bf16.msra.mxu1 %v1983_v16  ;;  %1611 = vmatprep.mubr.msk.bf16.mxu1 %vm1904_vm1, %v1903_v17 }
 0x254   :  { %1609 = vmatprep.subr.bf16.mxu1 %v1903_v17 }
 0x257   :  { %1610 = vmatpush3.bf16.msra.mxu1 %v1992_v18 }
 0x258   :  { %1623 = vmatprep.subr.bf16.mxu1 %v1903_v17 }
 0x325   :  { %v236_v25 = vpop.f32.mrb[0].mxu1 }
 0x326   :  { %v242_v26 = vadd.f32 %v236_v25, %v132_v24  ;;  %v1605_v27 = vpop.f32.mrb[1].mxu1 }
 0x327   :  { %v239_v28 = vpop.f32.mrb[2].mxu1 }
 0x328   :  { %1758 = vtanh.f32 %v242_v26  ;;  %v1606_v29 = vpop.f32.mrb[3].mxu1  ;;  %v1492_v31 = vmul.f32 -1.442695, %v242_v26 }
 0x32a   :  { %1760 = vpow2.f32 %v1492_v31 }
 0x332   :  { %v1759_v30 = vpop.eup %1758 }
 0x333   :  { %256 = vrot.lane.b32.xlu1 %v1759_v30, %s1902_s1 }
 0x334   :  { %v1761_v32 = vpop.eup %1760 }
 0x335   :  { %v246_v33 = vadd.f32 1.0, %v1761_v32 }
 0x337   :  { %1762 = vrcp.f32 %v246_v33 }
 0x341   :  { %v1763_v34 = vpop.eup %1762 }
 0x342   :  { %v254_v38 = vmul.f32 %v1763_v34, %v252_v37 }
 0x3a5   :  { %v257_v35 = vpop.permute.xlu1 %256 }
 0x3a6   :  { %v259_v36 = vmul.f32 %v1763_v34, %v257_v35  ;;  %v145_v35 = vadd.f32 %v1972_v3, %v144_v6 }
 0x3a8   :  { %261 = vrot.lane.b32.xlu1 %v259_v36, %s1906_s2 }
 0x41a   :  { %v262_v39 = vpop.permute.xlu1 %261 }
 0x41b   :  { %v264_v40 = vadd.f32 %v262_v39, %v254_v38 }
 0x41d   :  { %1764 = vtanh.f32 %v264_v40 }
 0x427   :  { %v1765_v41 = vpop.eup %1764 }
 0x428   :  { %267 = vrot.lane.b32.xlu0 %v1765_v41, %s1902_s1 }
 0x49a   :  { %v268_v42 = vpop.permute.xlu0 %267 }
 0x49b   :  { %v2020_v43 = vmul.f32 %v1763_v34, %v268_v42 }
 0x49d   :  { %v276_v44 = vpack.c.bf16 %v2020_v43, %v2020_v43 }
 0x49f   :  { %278 = vrot.lane.b32.xlu1 %v276_v44, %s1906_s2 }
 0x511   :  { %v279_v45 = vpop.permute.xlu1 %278 }
 0x512   :  { %1612 = vmatmul.mubr.msk.bf16.vlgmr.msra.gmra.mrb[4].mxu1 %vm181_vm2, %v279_v45 }
 0x513   :  { %1624 = vmatpush3.bf16.msra.mxu1 %v1983_v16  ;;  %1627 = vmatprep.mubr.msk.bf16.mxu1 %vm1904_vm1, %v1903_v17 }
 0x514   :  { %1625 = vmatprep.subr.bf16.mxu1 %v1903_v17 }
 0x517   :  { %1626 = vmatpush3.bf16.msra.mxu1 %v1992_v18 }
 0x518   :  { %1639 = vmatprep.subr.bf16.mxu1 %v1903_v17 }
 0x5e5   :  { %v317_v47 = vpop.f32.mrb[4].mxu1 }
 0x5e6   :  { %v323_v48 = vadd.f32 %v317_v47, %v137_v46  ;;  %v1613_v49 = vpop.f32.mrb[5].mxu1 }
 0x5e7   :  { %v320_v50 = vpop.f32.mrb[6].mxu1 }
 0x5e8   :  { %1766 = vtanh.f32 %v323_v48  ;;  %v1614_v51 = vpop.f32.mrb[7].mxu1  ;;  %v1494_v53 = vmul.f32 -1.442695, %v323_v48 }
 0x5ea   :  { %1768 = vpow2.f32 %v1494_v53 }
 0x5f2   :  { %v1767_v52 = vpop.eup %1766 }
 0x5f3   :  { %333 = vrot.lane.b32.xlu0 %v1767_v52, %s1902_s1 }
 0x5f4   :  { %v1769_v54 = vpop.eup %1768 }
 0x5f5   :  { %v327_v55 = vadd.f32 1.0, %v1769_v54 }
 0x5f7   :  { %1770 = vrcp.f32 %v327_v55 }
 0x601   :  { %v1771_v56 = vpop.eup %1770 }
 0x602   :  { %v331_v59 = vmul.f32 %v1771_v56, %v264_v40 }
 0x665   :  { %v334_v57 = vpop.permute.xlu0 %333 }
 0x666   :  { %v336_v58 = vmul.f32 %v1771_v56, %v334_v57  ;;  %v148_v57 = vadd.f32 %v1972_v3, %v2056_v9 }
 0x668   :  { %338 = vrot.lane.b32.xlu1 %v336_v58, %s1906_s2 }
 0x6da   :  { %v339_v60 = vpop.permute.xlu1 %338 }
 0x6db   :  { %v341_v61 = vadd.f32 %v339_v60, %v331_v59 }
 0x6dd   :  { %1772 = vtanh.f32 %v341_v61 }
 0x6e7   :  { %v1773_v0 = vpop.eup %1772 }
 0x6e8   :  { %344 = vrot.lane.b32.xlu0 %v1773_v0, %s1902_s1 }
 0x75a   :  { %v345_v1 = vpop.permute.xlu0 %344 }
 0x75b   :  { %v2047_v2 = vmul.f32 %v1771_v56, %v345_v1 }
 0x75d   :  { %v353_v4 = vpack.c.bf16 %v2047_v2, %v2047_v2 }
 0x75f   :  { %355 = vrot.lane.b32.xlu1 %v353_v4, %s1906_s2 }
 0x7d1   :  { %v356_v10 = vpop.permute.xlu1 %355 }
 0x7d2   :  { %1620 = vmatmul.mubr.msk.bf16.vlgmr.msra.gmra.mrb[8].mxu0 %vm181_vm2, %v356_v10 }
 0x7d3   :  { %1632 = vmatpush3.bf16.msra.mxu0 %v1983_v16  ;;  %1635 = vmatprep.mubr.msk.bf16.mxu0 %vm1904_vm1, %v1903_v17 }
 0x7d4   :  { %1633 = vmatprep.subr.bf16.mxu0 %v1903_v17 }
 0x7d7   :  { %1634 = vmatpush3.bf16.msra.mxu0 %v1992_v18 }
 0x7d8   :  { %1647 = vmatprep.subr.bf16.mxu0 %v1903_v17 }
 0x8a5   :  { %v394_v12 = vpop.f32.mrb[8].mxu0 }
 0x8a6   :  { %v400_v13 = vadd.f32 %v394_v12, %v140_v11  ;;  %v1621_v14 = vpop.f32.mrb[9].mxu0 }
 0x8a7   :  { %v397_v15 = vpop.f32.mrb[10].mxu0  ;;  %v1744_v14 = vld [vmem:[%s2316_s4] sm:$0xff]  }
 0x8a8   :  { %1774 = vtanh.f32 %v400_v13  ;;  %v1622_v19 = vpop.f32.mrb[11].mxu0  ;;  %v1496_v22 = vmul.f32 -1.442695, %v400_v13 }
 0x8aa   :  { %1776 = vpow2.f32 %v1496_v22 }
 0x8b2   :  { %v1775_v20 = vpop.eup %1774 }
 0x8b3   :  { %410 = vrot.lane.b32.xlu0 %v1775_v20, %s1902_s1 }
 0x8b4   :  { %v1777_v23 = vpop.eup %1776 }
 0x8b5   :  { %v404_v24 = vadd.f32 1.0, %v1777_v23 }
 0x8b7   :  { %1778 = vrcp.f32 %v404_v24 }
 0x8c1   :  { %v1779_v25 = vpop.eup %1778 }
 0x8c2   :  { %v408_v7 = vmul.f32 %v1779_v25, %v341_v61 }
 0x925   :  { %v411_v26 = vpop.permute.xlu0 %410 }
 0x926   :  { %v413_v27 = vmul.f32 %v1779_v25, %v411_v26 }
 0x928   :  { %415 = vrot.lane.b32.xlu1 %v413_v27, %s1906_s2 }
 0x99a   :  { %v416_v28 = vpop.permute.xlu1 %415 }
 0x99b   :  { %v418_v29 = vadd.f32 %v416_v28, %v408_v7 }
 0x99d   :  { %1780 = vtanh.f32 %v418_v29 }
 0x9a7   :  { %v1781_v30 = vpop.eup %1780 }
 0x9a8   :  { %421 = vrot.lane.b32.xlu0 %v1781_v30, %s1902_s1 }
 0xa1a   :  { %v422_v31 = vpop.permute.xlu0 %421 }
 0xa1b   :  { %v2070_v32 = vmul.f32 %v1779_v25, %v422_v31 }
 0xa1d   :  { %v430_v33 = vpack.c.bf16 %v2070_v32, %v2070_v32 }
 0xa1f   :  { %432 = vrot.lane.b32.xlu1 %v430_v33, %s1906_s2 }
 0xa91   :  { %v433_v34 = vpop.permute.xlu1 %432 }
 0xa92   :  { %1628 = vmatmul.mubr.msk.bf16.vlgmr.msra.gmra.mrb[8].mxu1 %vm181_vm2, %v433_v34 }
 0xa93   :  { %1640 = vmatpush3.bf16.msra.mxu1 %v1983_v16  ;;  %1643 = vmatprep.mubr.msk.bf16.mxu1 %vm1904_vm1, %v1903_v17 }
 0xa94   :  { %1641 = vmatprep.subr.bf16.mxu1 %v1903_v17 }
 0xa97   :  { %1642 = vmatpush3.bf16.msra.mxu1 %v1992_v18 }
 0xa98   :  { %1655 = vmatprep.subr.bf16.mxu1 %v1744_v14 }
 0xb65   :  { %v471_v36 = vpop.f32.mrb[8].mxu1 }
 0xb66   :  { %v477_v37 = vadd.f32 %v471_v36, %v145_v35  ;;  %v1629_v38 = vpop.f32.mrb[9].mxu1  ;;  %v2138_v36 = vld [vmem:[%s2318_s6] ss:$0 sm:$0xff] }
 0xb67   :  { %v474_v39 = vpop.f32.mrb[10].mxu1 }
 0xb68   :  { %1782 = vtanh.f32 %v477_v37  ;;  %v1630_v40 = vpop.f32.mrb[11].mxu1  ;;  %v1498_v42 = vmul.f32 -1.442695, %v477_v37 }
 0xb6a   :  { %1784 = vpow2.f32 %v1498_v42 }
 0xb72   :  { %v1783_v41 = vpop.eup %1782 }
 0xb73   :  { %487 = vrot.lane.b32.xlu0 %v1783_v41, %s1902_s1 }
 0xb74   :  { %v1785_v44 = vpop.eup %1784 }
 0xb75   :  { %v481_v45 = vadd.f32 1.0, %v1785_v44 }
 0xb77   :  { %1786 = vrcp.f32 %v481_v45 }
 0xb81   :  { %v1787_v46 = vpop.eup %1786 }
 0xb82   :  { %v485_v49 = vmul.f32 %v1787_v46, %v418_v29  ;;  %v153_v29 = vadd.f32 %v2052_v5, %v1972_v3 }
 0xbe5   :  { %v488_v47 = vpop.permute.xlu0 %487 }
 0xbe6   :  { %v490_v48 = vmul.f32 %v1787_v46, %v488_v47 }
 0xbe8   :  { %492 = vrot.lane.b32.xlu1 %v490_v48, %s1906_s2 }
 0xc5a   :  { %v493_v50 = vpop.permute.xlu1 %492 }
 0xc5b   :  { %v495_v51 = vadd.f32 %v493_v50, %v485_v49 }
 0xc5d   :  { %1788 = vtanh.f32 %v495_v51 }
 0xc67   :  { %v1789_v52 = vpop.eup %1788 }
 0xc68   :  { %498 = vrot.lane.b32.xlu0 %v1789_v52, %s1902_s1 }
 0xcda   :  { %v499_v53 = vpop.permute.xlu0 %498 }
 0xcdb   :  { %v2085_v54 = vmul.f32 %v1787_v46, %v499_v53 }
 0xcdd   :  { %v507_v55 = vpack.c.bf16 %v2085_v54, %v2085_v54 }
 0xcdf   :  { %509 = vrot.lane.b32.xlu1 %v507_v55, %s1906_s2 }
 0xd51   :  { %v510_v56 = vpop.permute.xlu1 %509 }
 0xd52   :  { %1636 = vmatmul.mubr.msk.bf16.vlgmr.msra.gmra.mrb[12].mxu0 %vm181_vm2, %v510_v56 }
 0xd53   :  { %1648 = vmatpush3.bf16.msra.mxu0 %v1983_v16  ;;  %1651 = vmatprep.mubr.msk.bf16.mxu0 %vm1904_vm1, %v1903_v17 }
 0xd54   :  { %1649 = vmatprep.subr.bf16.mxu0 %v1903_v17 }
 0xd57   :  { %1650 = vmatpush3.bf16.msra.mxu0 %v1992_v18 }
 0xd58   :  { %1667 = vmatprep.subr.bf16.mxu0 %v1903_v17 }
 0xe25   :  { %v548_v58 = vpop.f32.mrb[12].mxu0 }
 0xe26   :  { %v554_v59 = vadd.f32 %v548_v58, %v148_v57  ;;  %v1637_v60 = vpop.f32.mrb[13].mxu0 }
 0xe27   :  { %v551_v61 = vpop.f32.mrb[14].mxu0 }
 0xe28   :  { %1790 = vtanh.f32 %v554_v59  ;;  %v1638_v62 = vpop.f32.mrb[15].mxu0  ;;  %v1500_v16 = vmul.f32 -1.442695, %v554_v59 }
 0xe2a   :  { %1792 = vpow2.f32 %v1500_v16  ;;  %v2160_v16 = vld [vmem:[%s2317_s5] sm:$0xff]  }
 0xe32   :  { %v1791_v63 = vpop.eup %1790 }
 0xe33   :  { %564 = vrot.lane.b32.xlu0 %v1791_v63, %s1902_s1 }
 0xe34   :  { %v1793_v0 = vpop.eup %1792 }
 0xe35   :  { %v558_v1 = vadd.f32 1.0, %v1793_v0  ;;  %v2167_v0 = vld [vmem:[%s2317_s5 + $0x8] sm:$0xff]  }
 0xe37   :  { %1794 = vrcp.f32 %v558_v1 }
 0xe41   :  { %v1795_v18 = vpop.eup %1794 }
 0xe42   :  { %v562_v9 = vmul.f32 %v1795_v18, %v495_v51 }
 0xea5   :  { %v565_v4 = vpop.permute.xlu0 %564 }
 0xea6   :  { %v567_v6 = vmul.f32 %v1795_v18, %v565_v4 }
 0xea8   :  { %569 = vrot.lane.b32.xlu1 %v567_v6, %s1906_s2 }
 0xf1a   :  { %v570_v10 = vpop.permute.xlu1 %569 }
 0xf1b   :  { %v2101_v11 = vadd.f32 %v570_v10, %v562_v9  ;;  %v156_v10 = vadd.f32 %v2054_v8, %v1972_v3 }
 0xf1d   :  { %1796 = vtanh.f32 %v2101_v11 }
 0xf27   :  { %v1797_v12 = vpop.eup %1796 }
 0xf28   :  { %575 = vrot.lane.b32.xlu0 %v1797_v12, %s1902_s1 }
 0xf2c   :  { %178 = vrot.lane.b32.xlu0 %v2004_v21, %s1906_s2 }
 0xf30   :  { %349 = vrot.lane.b32.xlu0 %v2047_v2, %s1906_s2  ;;  %v1745_v2 = vld [vmem:[%s2316_s4 + $0x8] sm:$0xff]  }
 0xf9a   :  { %v576_v13 = vpop.permute.xlu0 %575 }
 0xf9b   :  { %v2112_v15 = vmul.f32 %v1795_v18, %v576_v13 }
 0xf9d   :  { %v584_v19 = vpack.c.bf16 %v2112_v15, %v2112_v15 }
 0xf9e   :  { %v179_v20 = vpop.permute.xlu0 %178 }
 0xf9f   :  { %182 = vst.msk [vmem:[#allocation2] sm:$0xff] %vm181_vm2, %v179_v20  ;;  %586 = vrot.lane.b32.xlu1 %v584_v19, %s1906_s2 }
 0xfa2   :  { %v350_v21 = vpop.permute.xlu0 %349 }
 0xfa3   :  { %352 = vst.msk [vmem:[#allocation2 + $0x10] sm:$0xff] %vm181_vm2, %v350_v21  ;;  %272 = vrot.lane.b32.xlu1 %v2020_v43, %s1906_s2 }
 0xfa6   :  { %v738_v43 = vld [vmem:[#allocation2] sm:$0xff] }
 0xfa7   :  { %426 = vrot.lane.b32.xlu1 %v2070_v32, %s1906_s2 }
 0xfaa   :  { %v740_v27 = vld [vmem:[#allocation2 + $0x10] sm:$0xff] }
0x1011   :  { %v587_v22 = vpop.permute.xlu1 %586 }
0x1012   :  { %1644 = vmatmul.mubr.msk.bf16.vlgmr.msra.gmra.mrb[12].mxu1 %vm181_vm2, %v587_v22 }
0x1013   :  { %1656 = vmatpush3.bf16.msra.mxu1 %v1744_v14 }
0x1014   :  { %1657 = vmatprep.subr.bf16.mxu1 %v1745_v2 }
0x1015   :  { %v273_v23 = vpop.permute.xlu1 %272 }
0x1016   :  { %275 = vst.msk [vmem:[#allocation2 + $0x8] sm:$0xff] %vm181_vm2, %v273_v23 }
0x1017   :  { %1658 = vmatpush3.bf16.msra.mxu1 %v1745_v2 }
0x1018   :  { %1683 = vmatprep.subr.bf16.mxu1 %v1903_v17 }
0x1019   :  { %v427_v24 = vpop.permute.xlu1 %426 }
0x101a   :  { %429 = vst.msk [vmem:[#allocation2 + $0x18] sm:$0xff] %vm181_vm2, %v427_v24 }
0x101d   :  { %v739_v25 = vld [vmem:[#allocation2 + $0x8] sm:$0xff] }
0x101e   :  { %v746_v26 = vpack.c.bf16 %v739_v25, %v738_v43 }
0x1020   :  { %1659 = vmatprep.mubr.msk.bf16.mxu1 %vm181_vm2, %v746_v26 }
0x1021   :  { %v741_v7 = vld [vmem:[#allocation2 + $0x18] sm:$0xff] }
0x1022   :  { %v747_v28 = vpack.c.bf16 %v741_v7, %v740_v27 }
0x1024   :  { %1660 = vmatmul.mubr.msk.bf16.vlgmr.msra.gmra.mrb[16].mxu1 %vm181_vm2, %v747_v28 }
0x1025   :  { %1684 = vmatpush3.bf16.msra.mxu1 %v2160_v16 }
0x1026   :  { %1685 = vmatprep.subr.bf16.mxu1 %v1903_v17 }
0x1029   :  { %1686 = vmatpush3.bf16.msra.mxu1 %v2167_v0 }
0x102a   :  { %1699 = vmatprep.subr.bf16.mxu1 %v1903_v17 }
0x10e5   :  { %v625_v30 = vpop.f32.mrb[12].mxu1 }
0x10e6   :  { %v631_v31 = vadd.f32 %v625_v30, %v153_v29  ;;  %v1645_v32 = vpop.f32.mrb[13].mxu1 }
0x10e7   :  { %v628_v33 = vpop.f32.mrb[14].mxu1 }
0x10e8   :  { %1798 = vtanh.f32 %v631_v31  ;;  %v1646_v34 = vpop.f32.mrb[15].mxu1  ;;  %v1502_v42 = vmul.f32 -1.442695, %v631_v31 }
0x10f2   :  { %v1799_v35 = vpop.eup %1798 }
0x10f3   :  { %641 = vrot.lane.b32.xlu0 %v1799_v35, %s1902_s1 }
0x10f7   :  { %v2140_v37 = vpop.f32.mrb[16].mxu1 }
0x10f8   :  { %v823_v38 = vpop.f32.mrb[17].mxu1 }
0x10f9   :  { %v824_v39 = vadd.f32 %v2138_v36, %v823_v38  ;;  %v2143_v5 = vpop.f32.mrb[18].mxu1 }
0x10fa   :  { %v2145_v40 = vpop.f32.mrb[19].mxu1 }
0x10fb   :  { %1800 = vtanh.f32 %v824_v39  ;;  %v1512_v46 = vmul.f32 -1.442695, %v824_v39  ;;  %v827_v20 = vadd.f32 %v2138_v36, %v2145_v40 }
0x10fc   :  { %1802 = vpow2.f32 %v1502_v42 }
0x1105   :  { %v1801_v41 = vpop.eup %1800 }
0x1106   :  { %862 = vrot.lane.b32.xlu0 %v1801_v41, %s1902_s1  ;;  %v1803_v44 = vpop.eup %1802 }
0x1107   :  { %v635_v45 = vadd.f32 1.0, %v1803_v44 }
0x1109   :  { %1804 = vrcp.f32 %v635_v45 }
0x110a   :  { %1806 = vpow2.f32 %v1512_v46 }
0x1113   :  { %v1805_v47 = vpop.eup %1804 }
0x1114   :  { %v1807_v50 = vpop.eup %1806  ;;  %v639_v57 = vmul.f32 %v1805_v47, %v2101_v11 }
0x1115   :  { %v857_v51 = vadd.f32 1.0, %v1807_v50 }
0x1117   :  { %1808 = vrcp.f32 %v857_v51 }
0x1121   :  { %v1809_v52 = vpop.eup %1808 }
0x1165   :  { %v642_v48 = vpop.permute.xlu0 %641 }
0x1166   :  { %v644_v49 = vmul.f32 %v1805_v47, %v642_v48 }
0x1168   :  { %646 = vrot.lane.b32.xlu1 %v644_v49, %s1906_s2 }
0x1178   :  { %v863_v53 = vpop.permute.xlu0 %862 }
0x1179   :  { %v865_v55 = vmul.f32 %v1809_v52, %v863_v53 }
0x117b   :  { %1810 = vtanh.f32 %v865_v55 }
0x1185   :  { %v1811_v56 = vpop.eup %1810 }
0x1186   :  { %868 = vrot.lane.b32.xlu0 %v1811_v56, %s1905_s20 }
0x11da   :  { %v647_v58 = vpop.permute.xlu1 %646 }
0x11db   :  { %v2151_v59 = vadd.f32 %v647_v58, %v639_v57 }
0x11dd   :  { %1812 = vtanh.f32 %v2151_v59 }
0x11e7   :  { %v1813_v60 = vpop.eup %1812 }
0x11e8   :  { %652 = vrot.lane.b32.xlu1 %v1813_v60, %s1902_s1 }
0x11f8   :  { %v869_v61 = vpop.permute.xlu0 %868 }
0x11f9   :  { %v871_v62 = vmul.f32 %v1809_v52, %v869_v61 }
0x11fb   :  { %v872_v63 = vpack.c.bf16 %v871_v62, %v871_v62 }
0x11fd   :  { %874 = vrot.lane.b32.xlu0 %v872_v63, %s1906_s2 }
0x1201   :  { %940 = vrot.lane.b32.xlu0 %v865_v55, %s1906_s2  ;;  %v832_v55 = vadd.f32 %v2140_v37, %v2138_v36 }
0x125a   :  { %v653_v1 = vpop.permute.xlu1 %652 }
0x125b   :  { %v2171_v18 = vmul.f32 %v1805_v47, %v653_v1 }
0x125d   :  { %v661_v4 = vpack.c.bf16 %v2171_v18, %v2171_v18 }
0x125f   :  { %663 = vrot.lane.b32.xlu1 %v661_v4, %s1906_s2 }
0x126f   :  { %v875_v9 = vpop.permute.xlu0 %874 }
0x1273   :  { %v941_v28 = vpop.permute.xlu0 %940 }
0x12d1   :  { %v664_v6 = vpop.permute.xlu1 %663 }
0x12d2   :  { %1652 = vmatmul.mubr.msk.bf16.vlgmr.msra.gmra.mrb[16].mxu0 %vm181_vm2, %v664_v6 }
0x12d3   :  { %1668 = vmatpush3.bf16.msra.mxu0 %v2160_v16  ;;  %1671 = vmatprep.mubr.msk.bf16.mxu0 %vm1904_vm1, %v1903_v17 }
0x12d4   :  { %1669 = vmatprep.subr.bf16.mxu0 %v1903_v17 }
0x12d7   :  { %1670 = vmatpush3.bf16.msra.mxu0 %v2167_v0 }
0x12d8   :  { %1675 = vmatprep.subr.bf16.mxu0 %v1903_v17 }
0x12da   :  { %1672 = vmatmul.mubr.msk.bf16.vlgmr.msra.gmra.mrb[20].mxu0 %vm181_vm2, %v875_v9 }
0x12db   :  { %1676 = vmatpush3.bf16.msra.mxu0 %v2160_v16  ;;  %1679 = vmatprep.mubr.msk.bf16.mxu0 %vm1904_vm1, %v1903_v17 }
0x12dc   :  { %1677 = vmatprep.subr.bf16.mxu0 %v1903_v17 }
0x12df   :  { %1678 = vmatpush3.bf16.msra.mxu0 %v2167_v0 }
0x12e0   :  { %1691 = vmatprep.subr.bf16.mxu0 %v1903_v17 }
0x13a5   :  { %v702_v11 = vpop.f32.mrb[16].mxu0 }
0x13a6   :  { %v708_v12 = vadd.f32 %v702_v11, %v156_v10  ;;  %v1653_v13 = vpop.f32.mrb[17].mxu0 }
0x13a7   :  { %v705_v14 = vpop.f32.mrb[18].mxu0 }
0x13a8   :  { %v1654_v19 = vpop.f32.mrb[19].mxu0  ;;  %v1504_v34 = vmul.f32 -1.442695, %v708_v12 }
0x13ad   :  { %v925_v21 = vpop.f32.mrb[20].mxu0 }
0x13ae   :  { %v931_v2 = vadd.f32 %v925_v21, %v827_v20  ;;  %v1673_v22 = vpop.f32.mrb[21].mxu0 }
0x13af   :  { %v928_v23 = vpop.f32.mrb[22].mxu0 }
0x13b0   :  { %1814 = vtanh.f32 %v931_v2  ;;  %v1674_v24 = vpop.f32.mrb[23].mxu0  ;;  %v1516_v25 = vmul.f32 -1.442695, %v931_v2 }
0x13b2   :  { %1816 = vpow2.f32 %v1516_v25 }
0x13ba   :  { %v1815_v43 = vpop.eup %1814 }
0x13bb   :  { %945 = vrot.lane.b32.xlu1 %v1815_v43, %s1902_s1 }
0x13bc   :  { %v1817_v3 = vpop.eup %1816 }
0x13bd   :  { %v935_v8 = vadd.f32 1.0, %v1817_v3 }
0x13bf   :  { %1818 = vrcp.f32 %v935_v8 }
0x13c9   :  { %v1819_v26 = vpop.eup %1818 }
0x13ca   :  { %v943_v29 = vmul.f32 %v1819_v26, %v941_v28 }
0x142d   :  { %v946_v27 = vpop.permute.xlu1 %945 }
0x142e   :  { %v948_v7 = vmul.f32 %v1819_v26, %v946_v27  ;;  %v835_v27 = vadd.f32 %v2143_v5, %v2138_v36 }
0x1430   :  { %950 = vrot.lane.b32.xlu1 %v948_v7, %s1906_s2 }
0x14a2   :  { %v951_v30 = vpop.permute.xlu1 %950 }
0x14a3   :  { %v953_v31 = vadd.f32 %v951_v30, %v943_v29 }
0x14a5   :  { %1820 = vtanh.f32 %v953_v31 }
0x14a6   :  { %1822 = vtanh.f32 %v708_v12 }
0x14a7   :  { %1824 = vpow2.f32 %v1504_v34 }
0x14af   :  { %v1821_v32 = vpop.eup %1820 }
0x14b0   :  { %956 = vrot.lane.b32.xlu0 %v1821_v32, %s1902_s1  ;;  %v1823_v33 = vpop.eup %1822 }
0x14b1   :  { %v1825_v35 = vpop.eup %1824 }
0x14b2   :  { %v712_v38 = vadd.f32 1.0, %v1825_v35 }
0x14b4   :  { %718 = vrot.lane.b32.xlu0 %v1823_v33, %s1902_s1  ;;  %1826 = vrcp.f32 %v712_v38 }
0x14be   :  { %v1827_v42 = vpop.eup %1826 }
0x14bf   :  { %v716_v47 = vmul.f32 %v1827_v42, %v2151_v59 }
0x1522   :  { %v957_v39 = vpop.permute.xlu0 %956 }
0x1523   :  { %v959_v40 = vmul.f32 %v1819_v26, %v957_v39 }
0x1525   :  { %v960_v41 = vpack.c.bf16 %v959_v40, %v959_v40 }
0x1526   :  { %v719_v44 = vpop.permute.xlu0 %718 }
0x1527   :  { %v721_v45 = vmul.f32 %v1827_v42, %v719_v44  ;;  %962 = vrot.lane.b32.xlu1 %v960_v41, %s1906_s2 }
0x1529   :  { %723 = vrot.lane.b32.xlu0 %v721_v45, %s1906_s2 }
0x1599   :  { %v963_v46 = vpop.permute.xlu1 %962 }
0x159a   :  { %1680 = vmatmul.mubr.msk.bf16.vlgmr.msra.gmra.mrb[24].mxu0 %vm181_vm2, %v963_v46 }
0x159b   :  { %v724_v48 = vpop.permute.xlu0 %723  ;;  %1692 = vmatpush3.bf16.msra.mxu0 %v2160_v16  ;;  %1695 = vmatprep.mubr.msk.bf16.mxu0 %vm1904_vm1, %v1903_v17 }
0x159c   :  { %v726_v49 = vadd.f32 %v724_v48, %v716_v47  ;;  %1693 = vmatprep.subr.bf16.mxu0 %v1903_v17 }
0x159e   :  { %1828 = vtanh.f32 %v726_v49 }
0x159f   :  { %1694 = vmatpush3.bf16.msra.mxu0 %v2167_v0 }
0x15a0   :  { %1707 = vmatprep.subr.bf16.mxu0 %v1903_v17 }
0x15a8   :  { %v1829_v50 = vpop.eup %1828 }
0x15a9   :  { %729 = vrot.lane.b32.xlu0 %v1829_v50, %s1902_s1 }
0x15ad   :  { %503 = vrot.lane.b32.xlu0 %v2085_v54, %s1906_s2 }
0x15b1   :  { %657 = vrot.lane.b32.xlu0 %v2171_v18, %s1906_s2 }
0x161b   :  { %v730_v51 = vpop.permute.xlu0 %729 }
0x161c   :  { %v732_v11 = vmul.f32 %v1827_v42, %v730_v51 }
0x161f   :  { %v504_v52 = vpop.permute.xlu0 %503 }
0x1620   :  { %506 = vst.msk [vmem:[#allocation2 + $0x20] sm:$0xff] %vm181_vm2, %v504_v52 }
0x1623   :  { %v658_v53 = vpop.permute.xlu0 %657 }
0x1624   :  { %660 = vst.msk [vmem:[#allocation2 + $0x30] sm:$0xff] %vm181_vm2, %v658_v53 }
0x1627   :  { %v742_v21 = vld [vmem:[#allocation2 + $0x20] sm:$0xff] }
0x166d   :  { %v1001_v56 = vpop.f32.mrb[24].mxu0 }
0x166e   :  { %v1007_v57 = vadd.f32 %v1001_v56, %v832_v55  ;;  %v1681_v58 = vpop.f32.mrb[25].mxu0 }
0x166f   :  { %v1004_v59 = vpop.f32.mrb[26].mxu0 }
0x1670   :  { %1830 = vtanh.f32 %v1007_v57  ;;  %v1682_v60 = vpop.f32.mrb[27].mxu0  ;;  %v1518_v61 = vmul.f32 -1.442695, %v1007_v57 }
0x1672   :  { %1832 = vpow2.f32 %v1518_v61 }
0x167a   :  { %v1831_v54 = vpop.eup %1830 }
0x167b   :  { %1017 = vrot.lane.b32.xlu1 %v1831_v54, %s1902_s1 }
0x167c   :  { %v1833_v62 = vpop.eup %1832 }
0x167d   :  { %v1011_v63 = vadd.f32 1.0, %v1833_v62 }
0x167f   :  { %1834 = vrcp.f32 %v1011_v63 }
0x1689   :  { %v1835_v1 = vpop.eup %1834 }
0x168a   :  { %v1015_v37 = vmul.f32 %v1835_v1, %v953_v31 }
0x16ed   :  { %v1018_v18 = vpop.permute.xlu1 %1017 }
0x16ee   :  { %v1020_v4 = vmul.f32 %v1835_v1, %v1018_v18 }
0x16f0   :  { %1022 = vrot.lane.b32.xlu1 %v1020_v4, %s1906_s2 }
0x1762   :  { %v1023_v6 = vpop.permute.xlu1 %1022 }
0x1763   :  { %v1025_v9 = vadd.f32 %v1023_v6, %v1015_v37 }
0x1765   :  { %1836 = vtanh.f32 %v1025_v9 }
0x176f   :  { %v1837_v10 = vpop.eup %1836 }
0x1770   :  { %1028 = vrot.lane.b32.xlu1 %v1837_v10, %s1902_s1 }
0x1774   :  { %580 = vrot.lane.b32.xlu1 %v2112_v15, %s1906_s2  ;;  %v744_v15 = vld [vmem:[#allocation2 + $0x30] sm:$0xff] }
0x1778   :  { %734 = vrot.lane.b32.xlu1 %v732_v11, %s1906_s2 }
0x17e2   :  { %v1029_v12 = vpop.permute.xlu1 %1028 }
0x17e3   :  { %v1031_v13 = vmul.f32 %v1835_v1, %v1029_v12 }
0x17e5   :  { %v1032_v14 = vpack.c.bf16 %v1031_v13, %v1031_v13 }
0x17e6   :  { %v581_v19 = vpop.permute.xlu1 %580 }
0x17e7   :  { %583 = vst.msk [vmem:[#allocation2 + $0x28] sm:$0xff] %vm181_vm2, %v581_v19  ;;  %1034 = vrot.lane.b32.xlu0 %v1032_v14, %s1906_s2 }
0x17ea   :  { %v735_v20 = vpop.permute.xlu1 %734 }
0x17eb   :  { %737 = vst.msk [vmem:[#allocation2 + $0x38] sm:$0xff] %vm181_vm2, %v735_v20 }
0x17ee   :  { %v743_v2 = vld [vmem:[#allocation2 + $0x28] sm:$0xff] }
0x17ef   :  { %v748_v22 = vpack.c.bf16 %v743_v2, %v742_v21 }
0x17f1   :  { %1663 = vmatprep.mubr.msk.bf16.mxu1 %vm181_vm2, %v748_v22 }
0x17f2   :  { %v745_v23 = vld [vmem:[#allocation2 + $0x38] sm:$0xff] }
0x17f3   :  { %v749_v24 = vpack.c.bf16 %v745_v23, %v744_v15 }
0x17f5   :  { %1664 = vmatmul.mubr.msk.bf16.gmra.mrb[20].mxu1 %vm181_vm2, %v749_v24 }
0x17f6   :  { %1687 = vmatprep.mubr.msk.bf16.mxu1 %vm1904_vm1, %v1903_v17 }
0x1859   :  { %v1035_v43 = vpop.permute.xlu0 %1034 }
0x185a   :  { %1688 = vmatmul.mubr.msk.bf16.vlgmr.msra.gmra.mrb[24].mxu1 %vm181_vm2, %v1035_v43 }
0x185b   :  { %1700 = vmatpush3.bf16.msra.mxu1 %v2160_v16  ;;  %1703 = vmatprep.mubr.msk.bf16.mxu1 %vm1904_vm1, %v1903_v17 }
0x185c   :  { %1701 = vmatprep.subr.bf16.mxu1 %v1903_v17 }
0x185f   :  { %1702 = vmatpush3.bf16.msra.mxu1 %v2167_v0 }
0x1860   :  { %1715 = vmatprep.subr.bf16.mxu1 %v1903_v17 }
0x18c8   :  { %v2237_v25 = vpop.f32.mrb[20].mxu1 }
0x18c9   :  { %v839_v3 = vpop.f32.mrb[21].mxu1 }
0x18ca   :  { %v2239_v8 = vpop.f32.mrb[22].mxu1  ;;  %v840_v49 = vadd.f32 %v2138_v36, %v839_v3 }
0x18cb   :  { %v2241_v26 = vpop.f32.mrb[23].mxu1 }
0x18cc   :  { %v843_v10 = vadd.f32 %v2138_v36, %v2241_v26 }
0x192d   :  { %v1073_v7 = vpop.f32.mrb[24].mxu1 }
0x192e   :  { %v1079_v28 = vadd.f32 %v1073_v7, %v835_v27  ;;  %v1689_v29 = vpop.f32.mrb[25].mxu1 }
0x192f   :  { %v1076_v30 = vpop.f32.mrb[26].mxu1  ;;  %v848_v29 = vadd.f32 %v2237_v25, %v2138_v36 }
0x1930   :  { %1838 = vtanh.f32 %v1079_v28  ;;  %v1690_v31 = vpop.f32.mrb[27].mxu1  ;;  %v1520_v33 = vmul.f32 -1.442695, %v1079_v28 }
0x1932   :  { %1840 = vpow2.f32 %v1520_v33 }
0x193a   :  { %v1839_v32 = vpop.eup %1838 }
0x193b   :  { %1089 = vrot.lane.b32.xlu1 %v1839_v32, %s1902_s1 }
0x193c   :  { %v1841_v34 = vpop.eup %1840 }
0x193d   :  { %v1083_v35 = vadd.f32 1.0, %v1841_v34 }
0x193f   :  { %1842 = vrcp.f32 %v1083_v35 }
0x1949   :  { %v1843_v38 = vpop.eup %1842 }
0x194a   :  { %v1087_v5 = vmul.f32 %v1843_v38, %v1025_v9 }
0x19ad   :  { %v1090_v39 = vpop.permute.xlu1 %1089 }
0x19ae   :  { %v1092_v40 = vmul.f32 %v1843_v38, %v1090_v39 }
0x19b0   :  { %1094 = vrot.lane.b32.xlu0 %v1092_v40, %s1906_s2 }
0x1a22   :  { %v1095_v41 = vpop.permute.xlu0 %1094 }
0x1a23   :  { %v1097_v42 = vadd.f32 %v1095_v41, %v1087_v5 }
0x1a25   :  { %1844 = vtanh.f32 %v1097_v42 }
0x1a2f   :  { %v1845_v44 = vpop.eup %1844 }
0x1a30   :  { %1100 = vrot.lane.b32.xlu1 %v1845_v44, %s1902_s1 }
0x1aa2   :  { %v1101_v45 = vpop.permute.xlu1 %1100 }
0x1aa3   :  { %v1103_v46 = vmul.f32 %v1843_v38, %v1101_v45 }
0x1aa5   :  { %v1104_v47 = vpack.c.bf16 %v1103_v46, %v1103_v46 }
0x1aa7   :  { %1106 = vrot.lane.b32.xlu0 %v1104_v47, %s1906_s2 }
0x1b19   :  { %v1107_v48 = vpop.permute.xlu0 %1106 }
0x1b1a   :  { %1696 = vmatmul.mubr.msk.bf16.vlgmr.msra.gmra.mrb[28].mxu0 %vm181_vm2, %v1107_v48 }
0x1b1b   :  { %1708 = vmatpush3.bf16.msra.mxu0 %v2160_v16  ;;  %1711 = vmatprep.mubr.msk.bf16.mxu0 %vm1904_vm1, %v1903_v17 }
0x1b1c   :  { %1709 = vmatprep.subr.bf16.mxu0 %v1903_v17 }
0x1b1f   :  { %1710 = vmatpush3.bf16.msra.mxu0 %v2167_v0 }
0x1b20   :  { %1723 = vmatprep.subr.bf16.mxu0 %v1903_v17 }
0x1bed   :  { %v1145_v50 = vpop.f32.mrb[28].mxu0 }
0x1bee   :  { %v1151_v51 = vadd.f32 %v1145_v50, %v840_v49  ;;  %v1697_v52 = vpop.f32.mrb[29].mxu0 }
0x1bef   :  { %v1148_v53 = vpop.f32.mrb[30].mxu0 }
0x1bf0   :  { %1846 = vtanh.f32 %v1151_v51  ;;  %v1698_v55 = vpop.f32.mrb[31].mxu0  ;;  %v1522_v57 = vmul.f32 -1.442695, %v1151_v51  ;;  %v851_v51 = vadd.f32 %v2239_v8, %v2138_v36 }
0x1bf2   :  { %1848 = vpow2.f32 %v1522_v57 }
0x1bfa   :  { %v1847_v56 = vpop.eup %1846 }
0x1bfb   :  { %1161 = vrot.lane.b32.xlu1 %v1847_v56, %s1902_s1 }
0x1bfc   :  { %v1849_v58 = vpop.eup %1848 }
0x1bfd   :  { %v1155_v59 = vadd.f32 1.0, %v1849_v58 }
0x1bff   :  { %1850 = vrcp.f32 %v1155_v59 }
0x1c09   :  { %v1851_v60 = vpop.eup %1850 }
0x1c0a   :  { %v1159_v62 = vmul.f32 %v1851_v60, %v1097_v42 }
0x1c6d   :  { %v1162_v54 = vpop.permute.xlu1 %1161 }
0x1c6e   :  { %v1164_v61 = vmul.f32 %v1851_v60, %v1162_v54 }
0x1c70   :  { %1166 = vrot.lane.b32.xlu0 %v1164_v61, %s1906_s2 }
0x1ce2   :  { %v1167_v63 = vpop.permute.xlu0 %1166 }
0x1ce3   :  { %v1169_v1 = vadd.f32 %v1167_v63, %v1159_v62 }
0x1ce5   :  { %1852 = vtanh.f32 %v1169_v1 }
0x1cef   :  { %v1853_v18 = vpop.eup %1852 }
0x1cf0   :  { %1172 = vrot.lane.b32.xlu1 %v1853_v18, %s1902_s1  ;;  %v1748_v18 = vld [vmem:[%s2319_s7] sm:$0xff]  }
0x1d62   :  { %v1173_v4 = vpop.permute.xlu1 %1172 }
0x1d63   :  { %v1175_v37 = vmul.f32 %v1851_v60, %v1173_v4  ;;  %v1749_v4 = vld [vmem:[%s2319_s7 + $0x8] sm:$0xff]   ;;  %s1470_s7 = sshll.u32 %s1907_s16, 4  ;;  %s1471_s7 = int_to_ptr.vmem [resolvable:$true] %s1470_s7 }
0x1d64   :  { %p1883_p1 = scmp.lt.s32.totalorder %s1471_s7, %s1471_s7 }
0x1d65   :  { %v1176_v6 = vpack.c.bf16 %v1175_v37, %v1175_v37 }
0x1d67   :  { %1178 = vrot.lane.b32.xlu0 %v1176_v6, %s1906_s2 }
0x1dd9   :  { %v1179_v9 = vpop.permute.xlu0 %1178 }
0x1dda   :  { %1704 = vmatmul.mubr.msk.bf16.vlgmr.msra.gmra.mrb[28].mxu1 %vm181_vm2, %v1179_v9 }
0x1ddb   :  { %1716 = vmatpush3.bf16.msra.mxu1 %v2160_v16  ;;  %1719 = vmatprep.mubr.msk.bf16.mxu1 %vm1904_vm1, %v1903_v17 }
0x1ddc   :  { %1717 = vmatprep.subr.bf16.mxu1 %v1903_v17 }
0x1ddf   :  { %1718 = vmatpush3.bf16.msra.mxu1 %v2167_v0 }
0x1ead   :  { %v1217_v11 = vpop.f32.mrb[28].mxu1 }
0x1eae   :  { %v1223_v12 = vadd.f32 %v1217_v11, %v843_v10  ;;  %v1705_v13 = vpop.f32.mrb[29].mxu1 }
0x1eaf   :  { %v1220_v14 = vpop.f32.mrb[30].mxu1 }
0x1eb0   :  { %1854 = vtanh.f32 %v1223_v12  ;;  %v1706_v19 = vpop.f32.mrb[31].mxu1  ;;  %v1524_v16 = vmul.f32 -1.442695, %v1223_v12  ;;  %v1529_v12 = vld [vmem:[%s2320_s8] ss:$0 sm:$0xff] }
0x1eb2   :  { %1856 = vpow2.f32 %v1524_v16 }
0x1eba   :  { %v1855_v20 = vpop.eup %1854 }
0x1ebb   :  { %1233 = vrot.lane.b32.xlu1 %v1855_v20, %s1902_s1 }
0x1ebc   :  { %v1857_v21 = vpop.eup %1856 }
0x1ebd   :  { %v1227_v2 = vadd.f32 1.0, %v1857_v21 }
0x1ebf   :  { %1858 = vrcp.f32 %v1227_v2 }
0x1ec9   :  { %v1859_v22 = vpop.eup %1858 }
0x1eca   :  { %v1231_v23 = vmul.f32 %v1859_v22, %v1169_v1 }
0x1f2d   :  { %v1234_v15 = vpop.permute.xlu1 %1233 }
0x1f2e   :  { %v1236_v0 = vmul.f32 %v1859_v22, %v1234_v15 }
0x1f30   :  { %1238 = vrot.lane.b32.xlu0 %v1236_v0, %s1906_s2 }
0x1fa2   :  { %v1239_v24 = vpop.permute.xlu0 %1238 }
0x1fa3   :  { %v1241_v43 = vadd.f32 %v1239_v24, %v1231_v23 }
0x1fa5   :  { %1860 = vtanh.f32 %v1241_v43 }
0x1faf   :  { %v1861_v3 = vpop.eup %1860 }
0x1fb0   :  { %1244 = vrot.lane.b32.xlu1 %v1861_v3, %s1902_s1 }
0x2022   :  { %v1245_v26 = vpop.permute.xlu1 %1244 }
0x2023   :  { %v1247_v27 = vmul.f32 %v1859_v22, %v1245_v26 }
0x2025   :  { %v1248_v7 = vpack.c.bf16 %v1247_v27, %v1247_v27 }
0x2027   :  { %1250 = vrot.lane.b32.xlu0 %v1248_v7, %s1906_s2 }
0x2099   :  { %v1251_v28 = vpop.permute.xlu0 %1250 }
0x209a   :  { %1712 = vmatmul.mubr.msk.bf16.vlgmr.msra.gmra.mrb[32].mxu0 %vm181_vm2, %v1251_v28 }
0x209b   :  { %1727 = vmatprep.mubr.msk.bf16.mxu0 %vm1904_vm1, %v1903_v17  ;;  %1724 = vmatpush3.bf16.msra.mxu0 %v1748_v18 }
0x209c   :  { %1725 = vmatprep.subr.bf16.mxu0 %v1903_v17 }
0x209f   :  { %1726 = vmatpush3.bf16.msra.mxu0 %v1749_v4 }
0x216d   :  { %v1289_v30 = vpop.f32.mrb[32].mxu0 }
0x216e   :  { %v1295_v31 = vadd.f32 %v1289_v30, %v848_v29  ;;  %v1713_v32 = vpop.f32.mrb[33].mxu0 }
0x216f   :  { %v1292_v33 = vpop.f32.mrb[34].mxu0 }
0x2170   :  { %1862 = vtanh.f32 %v1295_v31  ;;  %v1714_v34 = vpop.f32.mrb[35].mxu0  ;;  %v1526_v38 = vmul.f32 -1.442695, %v1295_v31 }
0x2172   :  { %1864 = vpow2.f32 %v1526_v38 }
0x217a   :  { %v1863_v35 = vpop.eup %1862 }
0x217b   :  { %1305 = vrot.lane.b32.xlu1 %v1863_v35, %s1902_s1 }
0x217c   :  { %v1865_v39 = vpop.eup %1864 }
0x217d   :  { %v1299_v40 = vadd.f32 1.0, %v1865_v39 }
0x217f   :  { %1866 = vrcp.f32 %v1299_v40 }
0x2189   :  { %v1867_v5 = vpop.eup %1866 }
0x218a   :  { %v1303_v25 = vmul.f32 %v1867_v5, %v1241_v43 }
0x21ed   :  { %v1306_v41 = vpop.permute.xlu1 %1305 }
0x21ee   :  { %v1308_v42 = vmul.f32 %v1867_v5, %v1306_v41 }
0x21f0   :  { %1310 = vrot.lane.b32.xlu0 %v1308_v42, %s1906_s2 }
0x2262   :  { %v1311_v44 = vpop.permute.xlu0 %1310 }
0x2263   :  { %v1313_v45 = vadd.f32 %v1311_v44, %v1303_v25 }
0x2265   :  { %1868 = vtanh.f32 %v1313_v45 }
0x226f   :  { %v1869_v46 = vpop.eup %1868 }
0x2270   :  { %1316 = vrot.lane.b32.xlu1 %v1869_v46, %s1902_s1 }
0x22e2   :  { %v1317_v47 = vpop.permute.xlu1 %1316 }
0x22e3   :  { %v1319_v48 = vmul.f32 %v1867_v5, %v1317_v47 }
0x22e5   :  { %v1320_v49 = vpack.c.bf16 %v1319_v48, %v1319_v48 }
0x22e7   :  { %1322 = vrot.lane.b32.xlu0 %v1320_v49, %s1906_s2 }
0x2359   :  { %v1323_v50 = vpop.permute.xlu0 %1322 }
0x235a   :  { %1720 = vmatmul.mubr.msk.bf16.vlgmr.msra.gmra.mrb[32].mxu1 %vm181_vm2, %v1323_v50 }
0x242d   :  { %v1361_v52 = vpop.f32.mrb[32].mxu1 }
0x242e   :  { %v1367_v53 = vadd.f32 %v1361_v52, %v851_v51  ;;  %v1721_v55 = vpop.f32.mrb[33].mxu1 }
0x242f   :  { %v1364_v56 = vpop.f32.mrb[34].mxu1 }
0x2430   :  { %1870 = vtanh.f32 %v1367_v53  ;;  %v1722_v57 = vpop.f32.mrb[35].mxu1  ;;  %v1528_v59 = vmul.f32 -1.442695, %v1367_v53 }
0x2432   :  { %1872 = vpow2.f32 %v1528_v59 }
0x243a   :  { %v1871_v58 = vpop.eup %1870 }
0x243b   :  { %1377 = vrot.lane.b32.xlu1 %v1871_v58, %s1902_s1 }
0x243c   :  { %v1873_v60 = vpop.eup %1872 }
0x243d   :  { %v1371_v54 = vadd.f32 1.0, %v1873_v60 }
0x243f   :  { %1874 = vrcp.f32 %v1371_v54 }
0x2449   :  { %v1875_v61 = vpop.eup %1874 }
0x244a   :  { %v1375_v36 = vmul.f32 %v1875_v61, %v1313_v45 }
0x24ad   :  { %v1378_v62 = vpop.permute.xlu1 %1377 }
0x24ae   :  { %v1380_v63 = vmul.f32 %v1875_v61, %v1378_v62 }
0x24b0   :  { %1382 = vrot.lane.b32.xlu0 %v1380_v63, %s1906_s2 }
0x2522   :  { %v1383_v8 = vpop.permute.xlu0 %1382 }
0x2523   :  { %v1385_v1 = vadd.f32 %v1383_v8, %v1375_v36 }
0x2525   :  { %1876 = vtanh.f32 %v1385_v1 }
0x252f   :  { %v1877_v37 = vpop.eup %1876 }
0x2530   :  { %1388 = vrot.lane.b32.xlu1 %v1877_v37, %s1902_s1  ;;  %s1878_s1 = scalar_lea.vmem %s1471_s7, 128 }
0x2531   :  { %p1879_p0 = scmp.ne.s32.totalorder %s1471_s7, %s1878_s1  ;;  %p1884_p2 = scmp.lt.s32.totalorder %s1878_s1, %s1878_s1 }
0x2533   :  { %p1885_p3 = por %p1884_p2, %p1883_p1 }
0x2535   :  { %p1886_p4 = pnand %p1885_p3, %p1879_p0 }
0x25a2   :  { %v1389_v6 = vpop.permute.xlu1 %1388 }
0x25a3   :  { %v1391_v9 = vmul.f32 %v1875_v61, %v1389_v6 }
0x25a5   :  { %v1392_v10 = vpack.c.bf16 %v1391_v9, %v1391_v9 }
0x25a7   :  { %1405 = vrot.lane.b32.xlu0 %v1392_v10, %s1906_s2 }
0x2619   :  { %v1406_v11 = vpop.permute.xlu0 %1405 }
0x261a   :  { %1728 = vmatmul.mubr.msk.bf16.vlgmr.msra.gmra.mrb[36].mxu0 %vm181_vm2, %v1406_v11 }
0x26ed   :  { %v1456_v13 = vpop.f32.mrb[36].mxu0 }
0x26ee   :  { %v1457_v17 = vadd.f32 %v1529_v12, %v1456_v13  ;;  %v1729_v14 = vpop.f32.mrb[37].mxu0 }
0x26ef   :  { %v1459_v19 = vpop.f32.mrb[38].mxu0 }
0x26f0   :  { %v1730_v20 = vpop.f32.mrb[39].mxu0  ;;  %1463 = vst.msk [vmem:[#allocation3] sm:$0xff] %vm1462_vm3, %v1457_v17 }
0x26f1   :  { %1889 = shalt.err (!%p1886_p4)
}
0x26f2   :  { %s1890_s8 = scalar_lea.hbm %s2321_s9, 128 }
0x26f3   :  { %p1891_p5 = scmp.ne.s32.totalorder %s2321_s9, %s1890_s8  ;;  %p1894_p6 = scmp.lt.u32.totalorder %s1890_s8, %s2321_s9 }
0x26f5   :  { %p1896_p7 = pnand %p1894_p6, %p1891_p5 }
0x26f7   :  { %1899 = shalt.err (!%p1896_p7)
}
0x26f8   :  { %1473 = dma.vmem_to_hbm [thread:$0]  %s1471_s7, 128, %s2321_s9, [#allocation4]  }
0x26f9   :  { %1900 = dma.done.wait [#allocation4], 128  }
0x26fa   :  { %1901 = vsyncadd [#allocation4], 4294967168 }
0x26fb   :  { %1477 = vsyncpa [#allocation4], 1 }

</bundles_post_ra>
